<compile_context>
chip_gen: v7x
topology: tpu7x:2x2x1
jax: 0.10.0
libtpu: 0.0.40
codegen_flags: <defaults>
</compile_context>

<pallas_src>
import numpy as np

import jax
import jax.numpy as jnp
from jax.experimental import pallas as pl
from jax.experimental.pallas import tpu as pltpu


def _cdiv(a, b):
    return (a + b - 1) // b


def _round_up(x, m):
    return ((x + m - 1) // m) * m


# -----------------------------------------------------------------------------
# Device-dependent knobs
# -----------------------------------------------------------------------------
def _default_num_groups():
    """2 frame-axis groups where the 'parallel' grid axis can shard across
    TensorCores (v4/v5p megacore, v7x); 1 on single-TC parts (v5e/v6e)."""
    try:
        kind = jax.devices()[0].device_kind.lower()
    except Exception:
        return 1
    if any(s in kind for s in ("v5 lite", "v5e", "v6 lite", "v6e", "trillium")):
        return 1
    if "cpu" in kind or "gpu" in kind:
        return 1
    return 2


def _vmem_limit_bytes():
    """Use at most 2/3 of physical VMEM (leaves compiler scratch headroom on
    v7x's 64 MiB); cap at 64 MiB (plenty for the largest tile config)."""
    try:
        phys = int(pltpu.get_tpu_info().vmem_capacity_bytes)
    except Exception:
        phys = 64 * 1024 * 1024
    return int(min(64 * 1024 * 1024, (phys * 2) // 3))


_SINGLE_BUFFER_OK = None


def _probe_single_buffer_support():
    """Check once whether pipeline_mode=pl.Buffered(1) compiles on this
    jax/Mosaic; if not, silently fall back to the default (double-buffered)
    BlockSpec so the kernel still runs."""
    try:
        spec = pl.BlockSpec((8, 128), lambda i: (0, 0),
                            pipeline_mode=pl.Buffered(buffer_count=1))
    except Exception:
        return False

    def _copy(x_ref, o_ref):
        o_ref[...] = x_ref[...]

    try:
        x = jnp.zeros((8, 128), jnp.float32)
        out = pl.pallas_call(
            _copy,
            out_shape=jax.ShapeDtypeStruct((8, 128), jnp.float32),
            grid=(2,),
            in_specs=[spec],
            out_specs=pl.BlockSpec((8, 128), lambda i: (0, 0)),
        )(x)
        jax.block_until_ready(out)
        return True
    except Exception:
        return False


def _single_buffer_supported():
    global _SINGLE_BUFFER_OK
    if _SINGLE_BUFFER_OK is None:
        _SINGLE_BUFFER_OK = _probe_single_buffer_support()
    return _SINGLE_BUFFER_OK


# -----------------------------------------------------------------------------
# Pallas kernel: one fused windowed real-DFT dot per step (M = 2*tm) +
# magnitude + loss partial-sum accumulation with VALU-only reductions.
# -----------------------------------------------------------------------------
def _vreg_block_sum(x):
    """Reduce [R, C] f32 (R % 8 == 0) to (8, min(C, 128)) partial sums using
    only vreg-wise VALU adds: sublane-slab fold then lane-block fold (no
    cross-lane XLU reductions that would contend with MXU pushes)."""
    r, c = x.shape
    y = x.reshape(r // 8, 8, c).sum(axis=0)      # slab fold: elementwise vreg adds
    if c <= 128:
        return y
    assert c % 128 == 0, "frequency half-width must be a multiple of 128"
    acc = y[:, 0:128]
    for j in range(1, c // 128):                 # lane-block fold: vreg adds
        acc = acc + y[:, j * 128:(j + 1) * 128]
    return acc


def _stft_loss_kernel(f_ref, basis_ref, out_ref):
    i = pl.program_id(1)                         # frame-tile index within group

    @pl.when(i == 0)
    def _():
        out_ref[...] = jnp.zeros_like(out_ref)

    lhs = f_ref[...]                             # [2*tm, n_fft] bf16
    tm = lhs.shape[0] // 2
    n_fft = lhs.shape[1]
    half = n_fft // 2
    bw = min(half, 128)

    # Single MXU dot: RHS ([n_fft, n_fft] basis) weight tiles stream once per
    # step and are amortized over both waveforms' frame rows.
    ri = jnp.dot(lhs, basis_ref[...], preferred_element_type=jnp.float32)

    re_h, im_h = ri[:tm, :half], ri[:tm, half:]
    re_y, im_y = ri[tm:, :half], ri[tm:, half:]

    # torch: S = sqrt(clamp(re^2 + im^2, min=1e-8)).  Column 0 is the exact DC
    # power because the DC sin column of the basis is exactly zero.
    p_h = jnp.maximum(re_h * re_h + im_h * im_h, 1e-8)
    p_y = jnp.maximum(re_y * re_y + im_y * im_y, 1e-8)

    # |log s_y - log s_h| = 0.5*|log(p_y/p_h)|  -> single EUP log, approx recip.
    abs_log = 0.5 * jnp.abs(jnp.log(p_y * pl.reciprocal(p_h, approx=True)))
    # (s_y - s_h)^2 = p_y + p_h - 2*sqrt(p_y*p_h)  -> one EUP sqrt, not two.
    sq_diff = p_y + p_h - 2.0 * jnp.sqrt(p_y * p_h)

    # Accumulate into the resident (24,128) block; padded frame rows give
    # exactly 0 (abs_log, sq_diff) and exactly 1e-8 per bin (p_y).
    out_ref[0:8, 0:bw] += _vreg_block_sum(abs_log)
    out_ref[8:16, 0:bw] += _vreg_block_sum(sq_diff)
    out_ref[16:24, 0:bw] += _vreg_block_sum(p_y)


# -----------------------------------------------------------------------------
# JAX glue: framing (torch.stft center=True, pad_mode='reflect'), DFT basis
# -----------------------------------------------------------------------------
def _frame(x, n_fft, hop_length):
    """x: [B, T] -> raw (un-windowed) frames [B * n_frames, n_fft]."""
    B, T = x.shape
    pad = n_fft // 2
    if T <= pad:
        raise ValueError(
            f"Waveform length {T} too short for reflect padding {pad} "
            f"(n_fft={n_fft}); torch.stft(center=True) has the same constraint.")
    xp = jnp.pad(x, ((0, 0), (pad, pad)), mode="reflect")
    n_frames = 1 + T // hop_length
    idx = (jnp.arange(n_frames) * hop_length)[:, None] + jnp.arange(n_fft)[None, :]
    frames = xp[:, idx]                                    # [B, n_frames, n_fft]
    return frames.reshape(B * n_frames, n_fft)


def _hann_window_padded(n_fft, win_length):
    """Periodic hann (torch default), zero-padded & centered to n_fft."""
    assert win_length <= n_fft
    m = np.arange(win_length)
    w = 0.5 - 0.5 * np.cos(2.0 * np.pi * m / float(win_length))
    lp = (n_fft - win_length) // 2
    w_full = np.zeros(n_fft, dtype=np.float64)
    w_full[lp:lp + win_length] = w
    return w_full


def _packed_dft_basis(n_fft, win_length, dtype):
    """Fused window*real-DFT basis, exactly [n_fft, n_fft]:
       cols [0, n/2)  = w*cos(2*pi*n*k/n_fft),  k = 0..n/2-1   (DC included)
       cols [n/2, n)  = -w*sin(...),            k = 0..n/2-1   (DC sin col == 0)
    The Nyquist bin (k = n/2, purely real) is handled in the wrapper."""
    half = n_fft // 2
    n = np.arange(n_fft)
    k = np.arange(half)
    ang = 2.0 * np.pi * np.outer(n, k) / float(n_fft)
    w_full = _hann_window_padded(n_fft, win_length)
    basis = np.concatenate(
        [w_full[:, None] * np.cos(ang), -(w_full[:, None] * np.sin(ang))],
        axis=1).astype(np.float32)
    return jnp.asarray(basis, dtype=dtype)


def stft_loss_single_scale(y_hat, y, n_fft, hop_length, win_length,
                           compute_dtype=jnp.bfloat16, num_groups=None):
    """Equivalent of STFTLoss_custom.forward -> (loss_mag, loss_sc)."""
    assert n_fft % 2 == 0
    y_hat = y_hat.astype(jnp.float32)
    y = y.astype(jnp.float32)

    frames_h = _frame(y_hat, n_fft, hop_length)            # [F, n_fft] f32, raw
    frames_y = _frame(y, n_fft, hop_length)
    F_total = frames_h.shape[0]
    half = n_fft // 2
    n_freq = half + 1

    if num_groups is None:
        num_groups = _default_num_groups()

    # Frame tile: MXU streamed dim is 2*tm after the LHS merge.  Per-step VMEM
    # ~= 2 bufs * (2*tm*n_fft)*2B frames + n_fft^2*2B basis (single-buffered)
    #    + ~16*tm*n_fft B f32 dot result / temporaries  -> tm=256 @ n_fft=2048
    # stays under ~28 MiB; tm=512 for the 512/1024-point scales.
    tm_cap = 256 if n_fft >= 2048 else 512
    tm = min(tm_cap, _round_up(_cdiv(F_total, num_groups), 8))
    F_pad = _round_up(F_total, num_groups * tm)
    inner = F_pad // (num_groups * tm)
    pad_rows = F_pad - F_total

    fh = jnp.pad(frames_h, ((0, pad_rows), (0, 0))).astype(compute_dtype)
    fy = jnp.pad(frames_y, ((0, pad_rows), (0, 0))).astype(compute_dtype)
    # Per-tile interleave so each grid step's LHS block is [2*tm, n_fft] with
    # rows 0..tm-1 = y_hat frames and rows tm..2tm-1 = y frames.
    n_tiles = F_pad // tm
    frames = jnp.stack(
        [fh.reshape(n_tiles, tm, n_fft), fy.reshape(n_tiles, tm, n_fft)],
        axis=1).reshape(n_tiles * 2 * tm, n_fft)

    basis = _packed_dft_basis(n_fft, win_length, compute_dtype)

    # The basis block is constant across the grid -> single-buffer it when the
    # installed jax/Mosaic supports it (saves ~n_fft^2*2 B of VMEM).
    if _single_buffer_supported():
        basis_spec = pl.BlockSpec((n_fft, n_fft), lambda c, i: (0, 0),
                                  pipeline_mode=pl.Buffered(buffer_count=1))
    else:
        basis_spec = pl.BlockSpec((n_fft, n_fft), lambda c, i: (0, 0))

    out = pl.pallas_call(
        _stft_loss_kernel,
        out_shape=jax.ShapeDtypeStruct((num_groups * 24, 128), jnp.float32),
        grid_spec=pltpu.PrefetchScalarGridSpec(
            num_scalar_prefetch=0,
            grid=(num_groups, inner),                       # reduction axis last
            in_specs=[
                pl.BlockSpec((2 * tm, n_fft), lambda c, i: (c * inner + i, 0)),
                basis_spec,
            ],
            out_specs=pl.BlockSpec((24, 128), lambda c, i: (c, 0)),
        ),
        compiler_params=pltpu.CompilerParams(
            dimension_semantics=("parallel", "arbitrary"),
            vmem_limit_bytes=_vmem_limit_bytes(),
        ),
    )(frames, basis)

    sums = out.reshape(num_groups, 3, 8, 128).sum(axis=(0, 2, 3))
    sum_abs_log, sum_sq_diff, sum_sq_y = sums[0], sums[1], sums[2]

    # Padded frame rows have re = im = 0 exactly, so each of their `half`
    # kernel bins contributes exactly the clamp floor 1e-8 to sum(S_y^2):
    # subtract that bias analytically (exact for the current padding scheme).
    sum_sq_y = sum_sq_y - jnp.float32(1e-8) * jnp.float32(pad_rows * half)

    # Nyquist bin (k = n_fft/2, purely real): two f32 matvecs + tiny JAX ops.
    w_full = _hann_window_padded(n_fft, win_length)
    nyq_vec = jnp.asarray(w_full * ((-1.0) ** np.arange(n_fft)),
                          dtype=jnp.float32)
    ny_h = frames_h @ nyq_vec
    ny_y = frames_y @ nyq_vec
    p_ny_h = jnp.maximum(ny_h * ny_h, 1e-8)
    p_ny_y = jnp.maximum(ny_y * ny_y, 1e-8)
    s_ny_h = jnp.sqrt(p_ny_h)
    s_ny_y = jnp.sqrt(p_ny_y)
    sum_abs_log = sum_abs_log + jnp.sum(jnp.abs(jnp.log(s_ny_y) - jnp.log(s_ny_h)))
    sum_sq_diff = sum_sq_diff + jnp.sum((s_ny_y - s_ny_h) ** 2)
    sum_sq_y = sum_sq_y + jnp.sum(p_ny_y)

    # F.l1_loss(log S_y, log S_hat), 'mean' over all B*n_freq*n_frames elements.
    loss_mag = sum_abs_log / jnp.float32(F_total * n_freq)
    # ||S_y - S_hat||_fro / ||S_y||_fro
    loss_sc = jnp.sqrt(sum_sq_diff) / jnp.sqrt(sum_sq_y)
    return loss_mag, loss_sc


class MultiScaleSTFTLoss:
    """JAX/Pallas port of MultiScaleSTFTLoss.forward -> (loss_mag, loss_sc)."""

    def __init__(self, n_ffts=(1024, 2048, 512), hop_lengths=(120, 240, 50),
                 win_lengths=(600, 1200, 240), compute_dtype=jnp.bfloat16):
        self.configs = list(zip(n_ffts, hop_lengths, win_lengths))
        self.compute_dtype = compute_dtype
        self.num_groups = _default_num_groups()
        _single_buffer_supported()      # warm the probe cache outside jit
        self._forward = jax.jit(self._forward_impl)

    def _forward_impl(self, y_hat, y):
        n = len(self.configs)
        loss_mag = jnp.float32(0.0)
        loss_sc = jnp.float32(0.0)
        for n_fft, hop, win in self.configs:
            lm, lsc = stft_loss_single_scale(
                y_hat, y, n_fft, hop, win,
                compute_dtype=self.compute_dtype, num_groups=self.num_groups)
            loss_mag = loss_mag + lm
            loss_sc = loss_sc + lsc
        return loss_mag / n, loss_sc / n

    def __call__(self, y_hat, y):
        if y_hat.ndim == 3:     # [B, 1, T] -> [B, T] (torch module squeezes)
            y_hat = y_hat[:, 0, :]
        if y.ndim == 3:
            y = y[:, 0, :]
        return self._forward(y_hat, y)


# -----------------------------------------------------------------------------
# Pure-JAX (f32) reference of the same math, for a loose numerical check.
# -----------------------------------------------------------------------------
def _full_dft_mag(frames, n_fft, win_length):
    n_freq = n_fft // 2 + 1
    n = np.arange(n_fft)
    k = np.arange(n_freq)
    ang = 2.0 * np.pi * np.outer(n, k) / float(n_fft)
    w = _hann_window_padded(n_fft, win_length)
    bc = jnp.asarray((w[:, None] * np.cos(ang)).astype(np.float32))
    bs = jnp.asarray((-(w[:, None] * np.sin(ang))).astype(np.float32))
    re = frames @ bc
    im = frames @ bs
    return jnp.sqrt(jnp.maximum(re * re + im * im, 1e-8))


def _reference_multiscale(y_hat, y, configs):
    lm_t = jnp.float32(0.0)
    lsc_t = jnp.float32(0.0)
    for n_fft, hop, win in configs:
        fh = _frame(y_hat.astype(jnp.float32), n_fft, hop)
        fy = _frame(y.astype(jnp.float32), n_fft, hop)
        sh = _full_dft_mag(fh, n_fft, win)
        sy = _full_dft_mag(fy, n_fft, win)
        lm_t = lm_t + jnp.mean(jnp.abs(jnp.log(sy) - jnp.log(sh)))
        lsc_t = lsc_t + jnp.sqrt(jnp.sum((sy - sh) ** 2)) / jnp.sqrt(jnp.sum(sy ** 2))
    n = len(configs)
    return lm_t / n, lsc_t / n


if __name__ == "__main__":
    # Small, module-consistent shapes: batch=2, waveform length T=1024, with
    # scaled-down STFT configs (same structure as the (1024,2048,512) default).
    key = jax.random.PRNGKey(0)
    k1, k2 = jax.random.split(key)
    B, T = 2, 1024
    y_hat = 0.1 * jax.random.normal(k1, (B, T), dtype=jnp.float32)
    y = 0.1 * jax.random.normal(k2, (B, T), dtype=jnp.float32)

    n_ffts = (256, 512, 128)
    hops = (64, 128, 32)
    wins = (160, 320, 96)

    loss_fn = MultiScaleSTFTLoss(n_ffts=n_ffts, hop_lengths=hops, win_lengths=wins)
    loss_mag, loss_sc = loss_fn(y_hat, y)
    loss_mag, loss_sc = jax.block_until_ready((loss_mag, loss_sc))

    ref_mag, ref_sc = _reference_multiscale(y_hat, y, list(zip(n_ffts, hops, wins)))
    ref_mag, ref_sc = jax.block_until_ready((ref_mag, ref_sc))

    assert bool(jnp.isfinite(loss_mag)) and bool(jnp.isfinite(loss_sc))
    # Loose tolerance: kernel uses bf16 MXU inputs with f32 accumulation.
    np.testing.assert_allclose(float(loss_mag), float(ref_mag), rtol=0.08, atol=0.02)
    np.testing.assert_allclose(float(loss_sc), float(ref_sc), rtol=0.08, atol=0.02)
    print("KERNEL_OK")
</pallas_src>

<mosaic_0001>
module attributes {stable_mosaic.version = 11 : i64} {
  func.func @_copy(%arg0: i32, %arg1: memref<8x128xf32, #tpu.memory_space<vmem>>, %arg2: memref<8x128xf32, #tpu.memory_space<vmem>>) attributes {dimension_semantics = [#tpu.dimension_semantics<arbitrary>], iteration_bounds = array<i64: 2>, scalar_prefetch = 0 : i64, scratch_operands = 0 : i64, tpu.core_type = #tpu.core_type<tc>, window_params = [{pipeline_mode = #tpu.pipeline_mode<synchronous>, transform_indices = @transform_0, window_bounds = array<i64: 8, 128>}, {pipeline_mode = #tpu.pipeline_mode<synchronous>, transform_indices = @transform_1, window_bounds = array<i64: 8, 128>}]} {
    %c0 = arith.constant 0 : index
    %c0_0 = arith.constant 0 : index
    %0 = vector.load %arg1[%c0, %c0_0] : memref<8x128xf32, #tpu.memory_space<vmem>>, vector<8x128xf32>
    %c0_1 = arith.constant 0 : index
    %c0_2 = arith.constant 0 : index
    %1 = vector.load %arg2[%c0_1, %c0_2] : memref<8x128xf32, #tpu.memory_space<vmem>>, vector<8x128xf32>
    tpu.vector_store %arg2[%c0_1, %c0_2], %0 {strides = array<i32>} : memref<8x128xf32, #tpu.memory_space<vmem>>, vector<8x128xf32>,
    return
  }
  func.func @transform_0(%arg0: i32) -> (i32, i32) {
    %c0_i32 = arith.constant 0 : i32
    %c0_i32_0 = arith.constant 0 : i32
    %c0_i32_1 = arith.constant 0 : i32
    return %c0_i32, %c0_i32_0 : i32, i32
  }
  func.func @transform_1(%arg0: i32) -> (i32, i32) {
    %c0_i32 = arith.constant 0 : i32
    %c0_i32_0 = arith.constant 0 : i32
    %c0_i32_1 = arith.constant 0 : i32
    return %c0_i32, %c0_i32_0 : i32, i32
  }
}

module attributes {stable_mosaic.version = 11 : i64} {
  func.func @_stft_loss_kernel(%arg0: i32, %arg1: i32, %arg2: memref<48x512xbf16, #tpu.memory_space<vmem>>, %arg3: memref<512x512xbf16, #tpu.memory_space<vmem>>, %arg4: memref<24x128xf32, #tpu.memory_space<vmem>>) attributes {dimension_semantics = [#tpu.dimension_semantics<parallel>, #tpu.dimension_semantics<arbitrary>], iteration_bounds = array<i64: 1, 1>, scalar_prefetch = 0 : i64, scratch_operands = 0 : i64, tpu.core_type = #tpu.core_type<tc>, window_params = [{transform_indices = @transform_0, window_bounds = array<i64: 48, 512>}, {pipeline_mode = #tpu.pipeline_mode<synchronous>, transform_indices = @transform_1, window_bounds = array<i64: 512, 512>}, {transform_indices = @transform_2, window_bounds = array<i64: 24, 128>}]} {
    %c0_i32 = arith.constant 0 : i32
    %0 = arith.cmpi eq, %arg1, %c0_i32 : i32
    %1 = arith.extui %0 : i1 to i32
    %c0_i32_0 = arith.constant 0 : i32
    %2 = arith.cmpi ne, %1, %c0_i32_0 : i32
    scf.if %2 {
      %cst_21 = arith.constant 0.000000e+00 : f32
      %56 = vector.broadcast %cst_21 : f32 to vector<24x128xf32>
      %c0_22 = arith.constant 0 : index
      %c0_23 = arith.constant 0 : index
      %57 = vector.load %arg4[%c0_22, %c0_23] : memref<24x128xf32, #tpu.memory_space<vmem>>, vector<24x128xf32>
      tpu.vector_store %arg4[%c0_22, %c0_23], %56 {strides = array<i32>} : memref<24x128xf32, #tpu.memory_space<vmem>>, vector<24x128xf32>,
    } else {
    }
    %c0 = arith.constant 0 : index
    %c0_1 = arith.constant 0 : index
    %3 = vector.load %arg2[%c0, %c0_1] : memref<48x512xbf16, #tpu.memory_space<vmem>>, vector<48x512xbf16>
    %c0_2 = arith.constant 0 : index
    %c0_3 = arith.constant 0 : index
    %4 = vector.load %arg3[%c0_2, %c0_3] : memref<512x512xbf16, #tpu.memory_space<vmem>>, vector<512x512xbf16>
    %cst = arith.constant dense<0.000000e+00> : vector<48x512xf32>
    %5 = tpu.matmul %3, %4, %cst {dimension_numbers = #tpu.dot_dimension_numbers<[1], [0], [0], [1], [0, 0, 1, 1], [], []>} : vector<48x512xbf16>, vector<512x512xbf16>, vector<48x512xf32> -> vector<48x512xf32>
    %6 = vector.extract_strided_slice %5 {offsets = [0, 0], sizes = [24, 256], strides = [1, 1]} : vector<48x512xf32> to vector<24x256xf32>
    %7 = vector.extract_strided_slice %5 {offsets = [0, 256], sizes = [24, 256], strides = [1, 1]} : vector<48x512xf32> to vector<24x256xf32>
    %8 = vector.extract_strided_slice %5 {offsets = [24, 0], sizes = [24, 256], strides = [1, 1]} : vector<48x512xf32> to vector<24x256xf32>
    %9 = vector.extract_strided_slice %5 {offsets = [24, 256], sizes = [24, 256], strides = [1, 1]} : vector<48x512xf32> to vector<24x256xf32>
    %10 = arith.mulf %6, %6 : vector<24x256xf32>
    %11 = arith.mulf %7, %7 : vector<24x256xf32>
    %12 = arith.addf %10, %11 : vector<24x256xf32>
    %cst_4 = arith.constant 9.99999993E-9 : f32
    %13 = vector.broadcast %cst_4 : f32 to vector<24x256xf32>
    %14 = arith.maximumf %12, %13 : vector<24x256xf32>
    %15 = arith.mulf %8, %8 : vector<24x256xf32>
    %16 = arith.mulf %9, %9 : vector<24x256xf32>
    %17 = arith.addf %15, %16 : vector<24x256xf32>
    %cst_5 = arith.constant 9.99999993E-9 : f32
    %18 = vector.broadcast %cst_5 : f32 to vector<24x256xf32>
    %19 = arith.maximumf %17, %18 : vector<24x256xf32>
    %20 = tpu.reciprocal %14 {approx = true} : vector<24x256xf32> -> vector<24x256xf32>
    %21 = arith.mulf %19, %20 : vector<24x256xf32>
    %22 = math.log %21 : vector<24x256xf32>
    %23 = math.absf %22 : vector<24x256xf32>
    %cst_6 = arith.constant 5.000000e-01 : f32
    %24 = vector.broadcast %cst_6 : f32 to vector<24x256xf32>
    %25 = arith.mulf %24, %23 : vector<24x256xf32>
    %26 = arith.addf %19, %14 : vector<24x256xf32>
    %27 = arith.mulf %19, %14 : vector<24x256xf32>
    %28 = math.sqrt %27 : vector<24x256xf32>
    %cst_7 = arith.constant 2.000000e+00 : f32
    %29 = vector.broadcast %cst_7 : f32 to vector<24x256xf32>
    %30 = arith.mulf %29, %28 : vector<24x256xf32>
    %31 = arith.subf %26, %30 : vector<24x256xf32>
    %c0_8 = arith.constant 0 : index
    %c0_9 = arith.constant 0 : index
    %32 = vector.load %arg4[%c0_8, %c0_9] : memref<24x128xf32, #tpu.memory_space<vmem>>, vector<8x128xf32>
    %33 = vector.shape_cast %25 : vector<24x256xf32> to vector<3x8x256xf32>
    %cst_10 = arith.constant dense<0.000000e+00> : vector<8x256xf32>
    %34 = vector.multi_reduction <add>, %33, %cst_10 [0] : vector<3x8x256xf32> to vector<8x256xf32>
    %35 = vector.extract_strided_slice %34 {offsets = [0, 0], sizes = [8, 128], strides = [1, 1]} : vector<8x256xf32> to vector<8x128xf32>
    %36 = vector.extract_strided_slice %34 {offsets = [0, 128], sizes = [8, 128], strides = [1, 1]} : vector<8x256xf32> to vector<8x128xf32>
    %37 = arith.addf %35, %36 : vector<8x128xf32>
    %38 = arith.addf %32, %37 : vector<8x128xf32>
    %c0_11 = arith.constant 0 : index
    %c0_12 = arith.constant 0 : index
    %39 = vector.load %arg4[%c0_11, %c0_12] : memref<24x128xf32, #tpu.memory_space<vmem>>, vector<8x128xf32>
    tpu.vector_store %arg4[%c0_11, %c0_12], %38 {strides = array<i32>} : memref<24x128xf32, #tpu.memory_space<vmem>>, vector<8x128xf32>,
    %c8 = arith.constant 8 : index
    %c0_13 = arith.constant 0 : index
    %40 = vector.load %arg4[%c8, %c0_13] : memref<24x128xf32, #tpu.memory_space<vmem>>, vector<8x128xf32>
    %41 = vector.shape_cast %31 : vector<24x256xf32> to vector<3x8x256xf32>
    %cst_14 = arith.constant dense<0.000000e+00> : vector<8x256xf32>
    %42 = vector.multi_reduction <add>, %41, %cst_14 [0] : vector<3x8x256xf32> to vector<8x256xf32>
    %43 = vector.extract_strided_slice %42 {offsets = [0, 0], sizes = [8, 128], strides = [1, 1]} : vector<8x256xf32> to vector<8x128xf32>
    %44 = vector.extract_strided_slice %42 {offsets = [0, 128], sizes = [8, 128], strides = [1, 1]} : vector<8x256xf32> to vector<8x128xf32>
    %45 = arith.addf %43, %44 : vector<8x128xf32>
    %46 = arith.addf %40, %45 : vector<8x128xf32>
    %c8_15 = arith.constant 8 : index
    %c0_16 = arith.constant 0 : index
    %47 = vector.load %arg4[%c8_15, %c0_16] : memref<24x128xf32, #tpu.memory_space<vmem>>, vector<8x128xf32>
    tpu.vector_store %arg4[%c8_15, %c0_16], %46 {strides = array<i32>} : memref<24x128xf32, #tpu.memory_space<vmem>>, vector<8x128xf32>,
    %c16 = arith.constant 16 : index
    %c0_17 = arith.constant 0 : index
    %48 = vector.load %arg4[%c16, %c0_17] : memref<24x128xf32, #tpu.memory_space<vmem>>, vector<8x128xf32>
    %49 = vector.shape_cast %19 : vector<24x256xf32> to vector<3x8x256xf32>
    %cst_18 = arith.constant dense<0.000000e+00> : vector<8x256xf32>
    %50 = vector.multi_reduction <add>, %49, %cst_18 [0] : vector<3x8x256xf32> to vector<8x256xf32>
    %51 = vector.extract_strided_slice %50 {offsets = [0, 0], sizes = [8, 128], strides = [1, 1]} : vector<8x256xf32> to vector<8x128xf32>
    %52 = vector.extract_strided_slice %50 {offsets = [0, 128], sizes = [8, 128], strides = [1, 1]} : vector<8x256xf32> to vector<8x128xf32>
    %53 = arith.addf %51, %52 : vector<8x128xf32>
    %54 = arith.addf %48, %53 : vector<8x128xf32>
    %c16_19 = arith.constant 16 : index
    %c0_20 = arith.constant 0 : index
    %55 = vector.load %arg4[%c16_19, %c0_20] : memref<24x128xf32, #tpu.memory_space<vmem>>, vector<8x128xf32>
    tpu.vector_store %arg4[%c16_19, %c0_20], %54 {strides = array<i32>} : memref<24x128xf32, #tpu.memory_space<vmem>>, vector<8x128xf32>,
    return
  }
  func.func @transform_0(%arg0: i32, %arg1: i32) -> (i32, i32) {
    %c1_i32 = arith.constant 1 : i32
    %0 = arith.muli %arg0, %c1_i32 : i32
    %1 = arith.addi %0, %arg1 : i32
    %c0_i32 = arith.constant 0 : i32
    %c0_i32_0 = arith.constant 0 : i32
    return %1, %c0_i32 : i32, i32
  }
  func.func @transform_1(%arg0: i32, %arg1: i32) -> (i32, i32) {
    %c0_i32 = arith.constant 0 : i32
    %c0_i32_0 = arith.constant 0 : i32
    %c0_i32_1 = arith.constant 0 : i32
    return %c0_i32, %c0_i32_0 : i32, i32
  }
  func.func @transform_2(%arg0: i32, %arg1: i32) -> (i32, i32) {
    %c0_i32 = arith.constant 0 : i32
    %c0_i32_0 = arith.constant 0 : i32
    return %arg0, %c0_i32 : i32, i32
  }
}

module attributes {stable_mosaic.version = 11 : i64} {
  func.func @_stft_loss_kernel(%arg0: i32, %arg1: i32, %arg2: memref<80x256xbf16, #tpu.memory_space<vmem>>, %arg3: memref<256x256xbf16, #tpu.memory_space<vmem>>, %arg4: memref<24x128xf32, #tpu.memory_space<vmem>>) attributes {dimension_semantics = [#tpu.dimension_semantics<parallel>, #tpu.dimension_semantics<arbitrary>], iteration_bounds = array<i64: 1, 1>, scalar_prefetch = 0 : i64, scratch_operands = 0 : i64, tpu.core_type = #tpu.core_type<tc>, window_params = [{transform_indices = @transform_0, window_bounds = array<i64: 80, 256>}, {pipeline_mode = #tpu.pipeline_mode<synchronous>, transform_indices = @transform_1, window_bounds = array<i64: 256, 256>}, {transform_indices = @transform_2, window_bounds = array<i64: 24, 128>}]} {
    %c0_i32 = arith.constant 0 : i32
    %0 = arith.cmpi eq, %arg1, %c0_i32 : i32
    %1 = arith.extui %0 : i1 to i32
    %c0_i32_0 = arith.constant 0 : i32
    %2 = arith.cmpi ne, %1, %c0_i32_0 : i32
    scf.if %2 {
      %cst_21 = arith.constant 0.000000e+00 : f32
      %47 = vector.broadcast %cst_21 : f32 to vector<24x128xf32>
      %c0_22 = arith.constant 0 : index
      %c0_23 = arith.constant 0 : index
      %48 = vector.load %arg4[%c0_22, %c0_23] : memref<24x128xf32, #tpu.memory_space<vmem>>, vector<24x128xf32>
      tpu.vector_store %arg4[%c0_22, %c0_23], %47 {strides = array<i32>} : memref<24x128xf32, #tpu.memory_space<vmem>>, vector<24x128xf32>,
    } else {
    }
    %c0 = arith.constant 0 : index
    %c0_1 = arith.constant 0 : index
    %3 = vector.load %arg2[%c0, %c0_1] : memref<80x256xbf16, #tpu.memory_space<vmem>>, vector<80x256xbf16>
    %c0_2 = arith.constant 0 : index
    %c0_3 = arith.constant 0 : index
    %4 = vector.load %arg3[%c0_2, %c0_3] : memref<256x256xbf16, #tpu.memory_space<vmem>>, vector<256x256xbf16>
    %cst = arith.constant dense<0.000000e+00> : vector<80x256xf32>
    %5 = tpu.matmul %3, %4, %cst {dimension_numbers = #tpu.dot_dimension_numbers<[1], [0], [0], [1], [0, 0, 1, 1], [], []>} : vector<80x256xbf16>, vector<256x256xbf16>, vector<80x256xf32> -> vector<80x256xf32>
    %6 = vector.extract_strided_slice %5 {offsets = [0, 0], sizes = [40, 128], strides = [1, 1]} : vector<80x256xf32> to vector<40x128xf32>
    %7 = vector.extract_strided_slice %5 {offsets = [0, 128], sizes = [40, 128], strides = [1, 1]} : vector<80x256xf32> to vector<40x128xf32>
    %8 = vector.extract_strided_slice %5 {offsets = [40, 0], sizes = [40, 128], strides = [1, 1]} : vector<80x256xf32> to vector<40x128xf32>
    %9 = vector.extract_strided_slice %5 {offsets = [40, 128], sizes = [40, 128], strides = [1, 1]} : vector<80x256xf32> to vector<40x128xf32>
    %10 = arith.mulf %6, %6 : vector<40x128xf32>
    %11 = arith.mulf %7, %7 : vector<40x128xf32>
    %12 = arith.addf %10, %11 : vector<40x128xf32>
    %cst_4 = arith.constant 9.99999993E-9 : f32
    %13 = vector.broadcast %cst_4 : f32 to vector<40x128xf32>
    %14 = arith.maximumf %12, %13 : vector<40x128xf32>
    %15 = arith.mulf %8, %8 : vector<40x128xf32>
    %16 = arith.mulf %9, %9 : vector<40x128xf32>
    %17 = arith.addf %15, %16 : vector<40x128xf32>
    %cst_5 = arith.constant 9.99999993E-9 : f32
    %18 = vector.broadcast %cst_5 : f32 to vector<40x128xf32>
    %19 = arith.maximumf %17, %18 : vector<40x128xf32>
    %20 = tpu.reciprocal %14 {approx = true} : vector<40x128xf32> -> vector<40x128xf32>
    %21 = arith.mulf %19, %20 : vector<40x128xf32>
    %22 = math.log %21 : vector<40x128xf32>
    %23 = math.absf %22 : vector<40x128xf32>
    %cst_6 = arith.constant 5.000000e-01 : f32
    %24 = vector.broadcast %cst_6 : f32 to vector<40x128xf32>
    %25 = arith.mulf %24, %23 : vector<40x128xf32>
    %26 = arith.addf %19, %14 : vector<40x128xf32>
    %27 = arith.mulf %19, %14 : vector<40x128xf32>
    %28 = math.sqrt %27 : vector<40x128xf32>
    %cst_7 = arith.constant 2.000000e+00 : f32
    %29 = vector.broadcast %cst_7 : f32 to vector<40x128xf32>
    %30 = arith.mulf %29, %28 : vector<40x128xf32>
    %31 = arith.subf %26, %30 : vector<40x128xf32>
    %c0_8 = arith.constant 0 : index
    %c0_9 = arith.constant 0 : index
    %32 = vector.load %arg4[%c0_8, %c0_9] : memref<24x128xf32, #tpu.memory_space<vmem>>, vector<8x128xf32>
    %33 = vector.shape_cast %25 : vector<40x128xf32> to vector<5x8x128xf32>
    %cst_10 = arith.constant dense<0.000000e+00> : vector<8x128xf32>
    %34 = vector.multi_reduction <add>, %33, %cst_10 [0] : vector<5x8x128xf32> to vector<8x128xf32>
    %35 = arith.addf %32, %34 : vector<8x128xf32>
    %c0_11 = arith.constant 0 : index
    %c0_12 = arith.constant 0 : index
    %36 = vector.load %arg4[%c0_11, %c0_12] : memref<24x128xf32, #tpu.memory_space<vmem>>, vector<8x128xf32>
    tpu.vector_store %arg4[%c0_11, %c0_12], %35 {strides = array<i32>} : memref<24x128xf32, #tpu.memory_space<vmem>>, vector<8x128xf32>,
    %c8 = arith.constant 8 : index
    %c0_13 = arith.constant 0 : index
    %37 = vector.load %arg4[%c8, %c0_13] : memref<24x128xf32, #tpu.memory_space<vmem>>, vector<8x128xf32>
    %38 = vector.shape_cast %31 : vector<40x128xf32> to vector<5x8x128xf32>
    %cst_14 = arith.constant dense<0.000000e+00> : vector<8x128xf32>
    %39 = vector.multi_reduction <add>, %38, %cst_14 [0] : vector<5x8x128xf32> to vector<8x128xf32>
    %40 = arith.addf %37, %39 : vector<8x128xf32>
    %c8_15 = arith.constant 8 : index
    %c0_16 = arith.constant 0 : index
    %41 = vector.load %arg4[%c8_15, %c0_16] : memref<24x128xf32, #tpu.memory_space<vmem>>, vector<8x128xf32>
    tpu.vector_store %arg4[%c8_15, %c0_16], %40 {strides = array<i32>} : memref<24x128xf32, #tpu.memory_space<vmem>>, vector<8x128xf32>,
    %c16 = arith.constant 16 : index
    %c0_17 = arith.constant 0 : index
    %42 = vector.load %arg4[%c16, %c0_17] : memref<24x128xf32, #tpu.memory_space<vmem>>, vector<8x128xf32>
    %43 = vector.shape_cast %19 : vector<40x128xf32> to vector<5x8x128xf32>
    %cst_18 = arith.constant dense<0.000000e+00> : vector<8x128xf32>
    %44 = vector.multi_reduction <add>, %43, %cst_18 [0] : vector<5x8x128xf32> to vector<8x128xf32>
    %45 = arith.addf %42, %44 : vector<8x128xf32>
    %c16_19 = arith.constant 16 : index
    %c0_20 = arith.constant 0 : index
    %46 = vector.load %arg4[%c16_19, %c0_20] : memref<24x128xf32, #tpu.memory_space<vmem>>, vector<8x128xf32>
    tpu.vector_store %arg4[%c16_19, %c0_20], %45 {strides = array<i32>} : memref<24x128xf32, #tpu.memory_space<vmem>>, vector<8x128xf32>,
    return
  }
  func.func @transform_0(%arg0: i32, %arg1: i32) -> (i32, i32) {
    %c1_i32 = arith.constant 1 : i32
    %0 = arith.muli %arg0, %c1_i32 : i32
    %1 = arith.addi %0, %arg1 : i32
    %c0_i32 = arith.constant 0 : i32
    %c0_i32_0 = arith.constant 0 : i32
    return %1, %c0_i32 : i32, i32
  }
  func.func @transform_1(%arg0: i32, %arg1: i32) -> (i32, i32) {
    %c0_i32 = arith.constant 0 : i32
    %c0_i32_0 = arith.constant 0 : i32
    %c0_i32_1 = arith.constant 0 : i32
    return %c0_i32, %c0_i32_0 : i32, i32
  }
  func.func @transform_2(%arg0: i32, %arg1: i32) -> (i32, i32) {
    %c0_i32 = arith.constant 0 : i32
    %c0_i32_0 = arith.constant 0 : i32
    return %arg0, %c0_i32 : i32, i32
  }
}

module attributes {stable_mosaic.version = 11 : i64} {
  func.func @_stft_loss_kernel(%arg0: i32, %arg1: i32, %arg2: memref<144x128xbf16, #tpu.memory_space<vmem>>, %arg3: memref<128x128xbf16, #tpu.memory_space<vmem>>, %arg4: memref<24x128xf32, #tpu.memory_space<vmem>>) attributes {dimension_semantics = [#tpu.dimension_semantics<parallel>, #tpu.dimension_semantics<arbitrary>], iteration_bounds = array<i64: 1, 1>, scalar_prefetch = 0 : i64, scratch_operands = 0 : i64, tpu.core_type = #tpu.core_type<tc>, window_params = [{transform_indices = @transform_0, window_bounds = array<i64: 144, 128>}, {pipeline_mode = #tpu.pipeline_mode<synchronous>, transform_indices = @transform_1, window_bounds = array<i64: 128, 128>}, {transform_indices = @transform_2, window_bounds = array<i64: 24, 128>}]} {
    %c0_i32 = arith.constant 0 : i32
    %0 = arith.cmpi eq, %arg1, %c0_i32 : i32
    %1 = arith.extui %0 : i1 to i32
    %c0_i32_0 = arith.constant 0 : i32
    %2 = arith.cmpi ne, %1, %c0_i32_0 : i32
    scf.if %2 {
      %cst_21 = arith.constant 0.000000e+00 : f32
      %47 = vector.broadcast %cst_21 : f32 to vector<24x128xf32>
      %c0_22 = arith.constant 0 : index
      %c0_23 = arith.constant 0 : index
      %48 = vector.load %arg4[%c0_22, %c0_23] : memref<24x128xf32, #tpu.memory_space<vmem>>, vector<24x128xf32>
      tpu.vector_store %arg4[%c0_22, %c0_23], %47 {strides = array<i32>} : memref<24x128xf32, #tpu.memory_space<vmem>>, vector<24x128xf32>,
    } else {
    }
    %c0 = arith.constant 0 : index
    %c0_1 = arith.constant 0 : index
    %3 = vector.load %arg2[%c0, %c0_1] : memref<144x128xbf16, #tpu.memory_space<vmem>>, vector<144x128xbf16>
    %c0_2 = arith.constant 0 : index
    %c0_3 = arith.constant 0 : index
    %4 = vector.load %arg3[%c0_2, %c0_3] : memref<128x128xbf16, #tpu.memory_space<vmem>>, vector<128x128xbf16>
    %cst = arith.constant dense<0.000000e+00> : vector<144x128xf32>
    %5 = tpu.matmul %3, %4, %cst {dimension_numbers = #tpu.dot_dimension_numbers<[1], [0], [0], [1], [0, 0, 1, 1], [], []>} : vector<144x128xbf16>, vector<128x128xbf16>, vector<144x128xf32> -> vector<144x128xf32>
    %6 = vector.extract_strided_slice %5 {offsets = [0, 0], sizes = [72, 64], strides = [1, 1]} : vector<144x128xf32> to vector<72x64xf32>
    %7 = vector.extract_strided_slice %5 {offsets = [0, 64], sizes = [72, 64], strides = [1, 1]} : vector<144x128xf32> to vector<72x64xf32>
    %8 = vector.extract_strided_slice %5 {offsets = [72, 0], sizes = [72, 64], strides = [1, 1]} : vector<144x128xf32> to vector<72x64xf32>
    %9 = vector.extract_strided_slice %5 {offsets = [72, 64], sizes = [72, 64], strides = [1, 1]} : vector<144x128xf32> to vector<72x64xf32>
    %10 = arith.mulf %6, %6 : vector<72x64xf32>
    %11 = arith.mulf %7, %7 : vector<72x64xf32>
    %12 = arith.addf %10, %11 : vector<72x64xf32>
    %cst_4 = arith.constant 9.99999993E-9 : f32
    %13 = vector.broadcast %cst_4 : f32 to vector<72x64xf32>
    %14 = arith.maximumf %12, %13 : vector<72x64xf32>
    %15 = arith.mulf %8, %8 : vector<72x64xf32>
    %16 = arith.mulf %9, %9 : vector<72x64xf32>
    %17 = arith.addf %15, %16 : vector<72x64xf32>
    %cst_5 = arith.constant 9.99999993E-9 : f32
    %18 = vector.broadcast %cst_5 : f32 to vector<72x64xf32>
    %19 = arith.maximumf %17, %18 : vector<72x64xf32>
    %20 = tpu.reciprocal %14 {approx = true} : vector<72x64xf32> -> vector<72x64xf32>
    %21 = arith.mulf %19, %20 : vector<72x64xf32>
    %22 = math.log %21 : vector<72x64xf32>
    %23 = math.absf %22 : vector<72x64xf32>
    %cst_6 = arith.constant 5.000000e-01 : f32
    %24 = vector.broadcast %cst_6 : f32 to vector<72x64xf32>
    %25 = arith.mulf %24, %23 : vector<72x64xf32>
    %26 = arith.addf %19, %14 : vector<72x64xf32>
    %27 = arith.mulf %19, %14 : vector<72x64xf32>
    %28 = math.sqrt %27 : vector<72x64xf32>
    %cst_7 = arith.constant 2.000000e+00 : f32
    %29 = vector.broadcast %cst_7 : f32 to vector<72x64xf32>
    %30 = arith.mulf %29, %28 : vector<72x64xf32>
    %31 = arith.subf %26, %30 : vector<72x64xf32>
    %c0_8 = arith.constant 0 : index
    %c0_9 = arith.constant 0 : index
    %32 = vector.load %arg4[%c0_8, %c0_9] : memref<24x128xf32, #tpu.memory_space<vmem>>, vector<8x64xf32>
    %33 = vector.shape_cast %25 : vector<72x64xf32> to vector<9x8x64xf32>
    %cst_10 = arith.constant dense<0.000000e+00> : vector<8x64xf32>
    %34 = vector.multi_reduction <add>, %33, %cst_10 [0] : vector<9x8x64xf32> to vector<8x64xf32>
    %35 = arith.addf %32, %34 : vector<8x64xf32>
    %c0_11 = arith.constant 0 : index
    %c0_12 = arith.constant 0 : index
    %36 = vector.load %arg4[%c0_11, %c0_12] : memref<24x128xf32, #tpu.memory_space<vmem>>, vector<8x64xf32>
    tpu.vector_store %arg4[%c0_11, %c0_12], %35 {strides = array<i32>} : memref<24x128xf32, #tpu.memory_space<vmem>>, vector<8x64xf32>,
    %c8 = arith.constant 8 : index
    %c0_13 = arith.constant 0 : index
    %37 = vector.load %arg4[%c8, %c0_13] : memref<24x128xf32, #tpu.memory_space<vmem>>, vector<8x64xf32>
    %38 = vector.shape_cast %31 : vector<72x64xf32> to vector<9x8x64xf32>
    %cst_14 = arith.constant dense<0.000000e+00> : vector<8x64xf32>
    %39 = vector.multi_reduction <add>, %38, %cst_14 [0] : vector<9x8x64xf32> to vector<8x64xf32>
    %40 = arith.addf %37, %39 : vector<8x64xf32>
    %c8_15 = arith.constant 8 : index
    %c0_16 = arith.constant 0 : index
    %41 = vector.load %arg4[%c8_15, %c0_16] : memref<24x128xf32, #tpu.memory_space<vmem>>, vector<8x64xf32>
    tpu.vector_store %arg4[%c8_15, %c0_16], %40 {strides = array<i32>} : memref<24x128xf32, #tpu.memory_space<vmem>>, vector<8x64xf32>,
    %c16 = arith.constant 16 : index
    %c0_17 = arith.constant 0 : index
    %42 = vector.load %arg4[%c16, %c0_17] : memref<24x128xf32, #tpu.memory_space<vmem>>, vector<8x64xf32>
    %43 = vector.shape_cast %19 : vector<72x64xf32> to vector<9x8x64xf32>
    %cst_18 = arith.constant dense<0.000000e+00> : vector<8x64xf32>
    %44 = vector.multi_reduction <add>, %43, %cst_18 [0] : vector<9x8x64xf32> to vector<8x64xf32>
    %45 = arith.addf %42, %44 : vector<8x64xf32>
    %c16_19 = arith.constant 16 : index
    %c0_20 = arith.constant 0 : index
    %46 = vector.load %arg4[%c16_19, %c0_20] : memref<24x128xf32, #tpu.memory_space<vmem>>, vector<8x64xf32>
    tpu.vector_store %arg4[%c16_19, %c0_20], %45 {strides = array<i32>} : memref<24x128xf32, #tpu.memory_space<vmem>>, vector<8x64xf32>,
    return
  }
  func.func @transform_0(%arg0: i32, %arg1: i32) -> (i32, i32) {
    %c1_i32 = arith.constant 1 : i32
    %0 = arith.muli %arg0, %c1_i32 : i32
    %1 = arith.addi %0, %arg1 : i32
    %c0_i32 = arith.constant 0 : i32
    %c0_i32_0 = arith.constant 0 : i32
    return %1, %c0_i32 : i32, i32
  }
  func.func @transform_1(%arg0: i32, %arg1: i32) -> (i32, i32) {
    %c0_i32 = arith.constant 0 : i32
    %c0_i32_0 = arith.constant 0 : i32
    %c0_i32_1 = arith.constant 0 : i32
    return %c0_i32, %c0_i32_0 : i32, i32
  }
  func.func @transform_2(%arg0: i32, %arg1: i32) -> (i32, i32) {
    %c0_i32 = arith.constant 0 : i32
    %c0_i32_0 = arith.constant 0 : i32
    return %arg0, %c0_i32 : i32, i32
  }
}

</mosaic_0001>

<bundles_post_ra>
// kernel: tpu_custom_call.1
= control target key start
LH: loop header
LB: loop body
LE: loop exit
PB: predicated region body
PF: predicated region fallthrough
CT: control target
= control target key end

     0   :  { %6 = vsyncpa [#allocation3], 0  ;;  %s340_s0 = inlined_call_operand.hbm [shape: f32[8,128], index: 0, kind: input, shape index: {}]   ;;  %s341_s1 = inlined_call_operand.hbm [shape: f32[8,128], index: 1, kind: output, shape index: {}]  }
   0x1   :  { %7 = vsyncpa [#allocation4], 0  ;;  %s261_s6 = smov 0  }
   0x2 LB: > { %s144_s7 = sadd.s32 4294967295, %s247_s6   ;;  %p145_p0 = scmp.ge.s32.totalorder %s247_s6, 1  ;;  %s247_s6 = sphi %s261_s6, %s13_s6  }
   0x3   : > { %p60_p1 = scmp.lt.s32.totalorder %s247_s6, 3  ;;  %p275_p3 = scmp.eq.s32.totalorder %s144_s7, 0 }
   0x4   : > { %s249_s10 = smov [#allocation2]   ;;  %s179_s15 = scalar_lea.hbm %s340_s0, 128 }
   0x5   : > { %p269_p2 = pnand %p145_p0, %p60_p1  ;;  %s73_s11 = sshll.u32 %s249_s10, 4  ;;  %s74_s11 = int_to_ptr.vmem [resolvable:$true] %s73_s11 }
   0x6   : > { %s346_s9 = scalar_select %p275_p3, 1, 0 }
   0x7   : > { %s345_s8 = scalar_select %p269_p2, 1, 0 }
   0x8   : > { %p161_p4 = pneg %p269_p2  ;;  %p180_p6 = scmp.ne.s32.totalorder %s340_s0, %s179_s15 }
   0x9   : > { %p186_p10 = scmp.lt.u32.totalorder %s179_s15, %s340_s0 }
   0xa   : > { %p283_p5 = pnand %p275_p3, %p161_p4 }
   0xc   : > { %p181_p7 = pneg %p283_p5 }
   0xe   : > { %p182_p8 = pnand %p181_p7, %p180_p6 }
  0x10   : > { %p183_p9 = pneg %p182_p8 }
  0x12   : > { %p188_p11 = pnand %p186_p10, %p183_p9 }
  0x14   : > { %191 = shalt.err (!%p188_p11)
}
  0x15   : > { %s192_s20 = scalar_lea.vmem %s74_s11, 128  ;;  %p200_p1 = scmp.lt.s32.totalorder %s74_s11, %s74_s11 }
  0x16   : > { %p193_p12 = scmp.ne.s32.totalorder %s74_s11, %s192_s20  ;;  %p201_p4 = scmp.lt.s32.totalorder %s192_s20, %s192_s20 }
  0x18   : > { %p195_p13 = pnand %p193_p12, %p181_p7  ;;  %p202_p3 = por %p201_p4, %p200_p1 }
  0x1a   : > { %p196_p0 = pneg %p195_p13 }
  0x1c   : > { %p203_p2 = pnand %p202_p3, %p196_p0 }
  0x1e   : > { %206 = shalt.err (!%p203_p2)
}
  0x1f   : > { %164 = dma.hbm_to_vmem [thread:$0]  (!%p283_p5), %s340_s0, 128, %s74_s11, [#allocation3]  }
  0x20   : > { %p348_p6 = scmp.ne.s32.totalorder %s345_s8, 0 }
  0x21   : > { %p349_p8 = scmp.ne.s32.totalorder (!%p348_p6), %s346_s9, 0 }
  0x22   : > { %86 = sbr.rel (%p348_p6) target bundleno = 67 (0x43), region = 24 }
  0x29   : > { %238 = dma.done.wait (%p349_p8), [#allocation3], 128  }
  0x2a   : > { %240 = vsyncadd (%p349_p8), [#allocation3], 4294967168  ;;  %s250_s23 = smov [#allocation5]   ;;  %p311_p2 = scmp.eq.s32.totalorder %s144_s7, 1  ;;  %v96_v0 = vld [vmem:[#allocation2] sm:$0xff] }
  0x2b   : > { %s105_s24 = sshll.u32 %s250_s23, 4  ;;  %97 = vst [vmem:[#allocation5] sm:$0xff] %v96_v0  ;;  %s106_s24 = int_to_ptr.vmem [resolvable:$true] %s105_s24 }
  0x2c   : > { %s207_s26 = scalar_lea.vmem %s106_s24, 128  ;;  %p214_p9 = scmp.lt.s32.totalorder %s106_s24, %s106_s24 }
  0x2d   : > { %p208_p3 = scmp.ne.s32.totalorder %s106_s24, %s207_s26  ;;  %p215_p10 = scmp.lt.s32.totalorder %s207_s26, %s207_s26 }
  0x2f   : > { %p209_p5 = pnand %p208_p3, %p311_p2  ;;  %p216_p11 = por %p215_p10, %p214_p9 }
  0x31   : > { %p210_p7 = pneg %p209_p5 }
  0x33   : > { %p217_p12 = pnand %p216_p11, %p210_p7 }
  0x35   : > { %220 = shalt.err (!%p217_p12)
}
  0x36   : > { %s221_s29 = scalar_lea.hbm %s341_s1, 128 }
  0x37   : > { %p222_p13 = scmp.ne.s32.totalorder %s341_s1, %s221_s29  ;;  %p227_p4 = scmp.lt.u32.totalorder %s221_s29, %s341_s1 }
  0x39   : > { %p223_p0 = pnand %p222_p13, %p311_p2 }
  0x3b   : > { %p224_p1 = pneg %p223_p0 }
  0x3d   : > { %p229_p6 = pnand %p227_p4, %p224_p1 }
  0x3f   : > { %232 = shalt.err (!%p229_p6)
}
  0x40   : > { %158 = dma.vmem_to_hbm [thread:$0]  (%p311_p2), %s106_s24, 128, %s341_s1, [#allocation4]  }
  0x41   : > { %242 = dma.done.wait (%p311_p2), [#allocation4], 128  }
  0x42   : > { %244 = vsyncadd (%p311_p2), [#allocation4], 4294967168 }
  0x43 PF: > { %s13_s6 = sadd.s32 1, %s247_s6  }
  0x44   : > { %p10_p8 = scmp.ge.s32.totalorder %s13_s6, 4  }
  0x46   :  { %12 = sbr.rel (!%p10_p8) target bundleno = 2 (0x2), region = 53 }
  0x4d   :  { %118 = vsyncpa [#allocation3], 1 }
  0x4e   :  { %120 = vsyncpa [#allocation3 + $0x1], 1 }
  0x4f   :  { %121 = vsyncpa [#allocation4], 1 }
  0x50   :  { %123 = vsyncpa [#allocation4 + $0x1], 1 }

// kernel: _forward_impl.4
= control target key start
LH: loop header
LB: loop body
LE: loop exit
PB: predicated region body
PF: predicated region fallthrough
CT: control target
= control target key end

     0   :  { %s2260_s1 = inlined_call_operand.vmem [shape: bf16[512,512], index: 1, kind: input, shape index: {}]   ;;  %s2261_s0 = inlined_call_operand.vmem [shape: bf16[48,512], index: 0, kind: input, shape index: {}]   ;;  %s2262_s2 = inlined_call_operand.vmem [shape: f32[24,128], index: 2, kind: output, shape index: {}]  }
   0x1   :  { %v1484_v0 = vld [vmem:[%s2260_s1 + $0x4] ss:$16 sps:$4 sm:$0xff]   ;;  %v1486_v1 = vld [vmem:[%s2260_s1 + $0xc] ss:$16 sps:$4 sm:$0xff]   ;;  %v1488_v2 = vld [vmem:[%s2260_s1] ss:$16 sps:$4 sm:$0xff]  }
   0x2   :  { %883 = vmatprep.subr.bf16.mxu0 %v1484_v0  ;;  %v1489_v3 = vld [vmem:[%s2260_s1 + $0x8] ss:$16 sps:$4 sm:$0xff]   ;;  %1009 = vmatprep.subr.bf16.mxu1 %v1486_v1  ;;  %v1490_v4 = vld [vmem:[%s2260_s1 + $0x24] ss:$16 sps:$4 sm:$0xff]   ;;  %v1492_v5 = vld [vmem:[%s2260_s1 + $0x2c] ss:$16 sps:$4 sm:$0xff]  }
   0x3   :  { %884 = vmatpush1.bf16.msra.mxu0 %v1488_v2  ;;  %1010 = vmatpush1.bf16.msra.mxu1 %v1489_v3  ;;  %v1494_v6 = vld [vmem:[%s2260_s1 + $0x20] ss:$16 sps:$4 sm:$0xff]   ;;  %v1495_v7 = vld [vmem:[%s2260_s1 + $0x28] ss:$16 sps:$4 sm:$0xff]   ;;  %v1496_v8 = vld [vmem:[%s2260_s1 + $0x44] ss:$16 sps:$4 sm:$0xff]  }
   0x4   :  { %885 = vmatprep.subr.bf16.mxu0 %v1490_v4  ;;  %1011 = vmatprep.subr.bf16.mxu1 %v1492_v5  ;;  %v1498_v9 = vld [vmem:[%s2260_s1 + $0x4c] ss:$16 sps:$4 sm:$0xff]   ;;  %v1500_v10 = vld [vmem:[%s2260_s1 + $0x40] ss:$16 sps:$4 sm:$0xff]   ;;  %v1501_v11 = vld [vmem:[%s2260_s1 + $0x48] ss:$16 sps:$4 sm:$0xff]  }
   0x5   :  { %v1502_v12 = vld [vmem:[%s2260_s1 + $0x64] ss:$16 sps:$4 sm:$0xff]   ;;  %v1504_v13 = vld [vmem:[%s2260_s1 + $0x6c] ss:$16 sps:$4 sm:$0xff]   ;;  %v1506_v14 = vld [vmem:[%s2260_s1 + $0x60] ss:$16 sps:$4 sm:$0xff]  }
   0x6   :  { %v1507_v15 = vld [vmem:[%s2260_s1 + $0x68] ss:$16 sps:$4 sm:$0xff]   ;;  %v1508_v16 = vld [vmem:[%s2260_s1 + $0x84] ss:$16 sps:$4 sm:$0xff]   ;;  %v1510_v17 = vld [vmem:[%s2260_s1 + $0x8c] ss:$16 sps:$4 sm:$0xff]  }
   0x7   :  { %886 = vmatpush1.bf16.msra.mxu0 %v1494_v6  ;;  %1012 = vmatpush1.bf16.msra.mxu1 %v1495_v7  ;;  %v1512_v18 = vld [vmem:[%s2260_s1 + $0x80] ss:$16 sps:$4 sm:$0xff]   ;;  %v1513_v19 = vld [vmem:[%s2260_s1 + $0x88] ss:$16 sps:$4 sm:$0xff]   ;;  %v1514_v20 = vld [vmem:[%s2260_s1 + $0xa4] ss:$16 sps:$4 sm:$0xff]  }
   0x8   :  { %887 = vmatprep.subr.bf16.mxu0 %v1496_v8  ;;  %1013 = vmatprep.subr.bf16.mxu1 %v1498_v9  ;;  %v1516_v21 = vld [vmem:[%s2260_s1 + $0xac] ss:$16 sps:$4 sm:$0xff]   ;;  %v1518_v22 = vld [vmem:[%s2260_s1 + $0xa0] ss:$16 sps:$4 sm:$0xff]   ;;  %v1519_v23 = vld [vmem:[%s2260_s1 + $0xa8] ss:$16 sps:$4 sm:$0xff]  }
   0x9   :  { %v1520_v24 = vld [vmem:[%s2260_s1 + $0xc4] ss:$16 sps:$4 sm:$0xff]   ;;  %v1522_v25 = vld [vmem:[%s2260_s1 + $0xcc] ss:$16 sps:$4 sm:$0xff]   ;;  %v1524_v26 = vld [vmem:[%s2260_s1 + $0xc0] ss:$16 sps:$4 sm:$0xff]  }
   0xa   :  { %v1525_v27 = vld [vmem:[%s2260_s1 + $0xc8] ss:$16 sps:$4 sm:$0xff]   ;;  %v1526_v28 = vld [vmem:[%s2260_s1 + $0xe4] ss:$16 sps:$4 sm:$0xff]   ;;  %v1528_v29 = vld [vmem:[%s2260_s1 + $0xec] ss:$16 sps:$4 sm:$0xff]  }
   0xb   :  { %888 = vmatpush1.bf16.msra.mxu0 %v1500_v10  ;;  %1014 = vmatpush1.bf16.msra.mxu1 %v1501_v11  ;;  %v1530_v30 = vld [vmem:[%s2260_s1 + $0xe0] ss:$16 sps:$4 sm:$0xff]   ;;  %v1531_v31 = vld [vmem:[%s2260_s1 + $0xe8] ss:$16 sps:$4 sm:$0xff]   ;;  %v1532_v32 = vld [vmem:[%s2260_s1 + $0x104] ss:$16 sps:$4 sm:$0xff]  }
   0xc   :  { %889 = vmatprep.subr.bf16.mxu0 %v1502_v12  ;;  %1015 = vmatprep.subr.bf16.mxu1 %v1504_v13  ;;  %v1534_v33 = vld [vmem:[%s2260_s1 + $0x10c] ss:$16 sps:$4 sm:$0xff]   ;;  %v1536_v34 = vld [vmem:[%s2260_s1 + $0x100] ss:$16 sps:$4 sm:$0xff]   ;;  %v1537_v35 = vld [vmem:[%s2260_s1 + $0x108] ss:$16 sps:$4 sm:$0xff]  }
   0xd   :  { %v1538_v36 = vld [vmem:[%s2260_s1 + $0x124] ss:$16 sps:$4 sm:$0xff]   ;;  %v1540_v37 = vld [vmem:[%s2260_s1 + $0x12c] ss:$16 sps:$4 sm:$0xff]   ;;  %v1542_v38 = vld [vmem:[%s2260_s1 + $0x120] ss:$16 sps:$4 sm:$0xff]  }
   0xe   :  { %v1543_v39 = vld [vmem:[%s2260_s1 + $0x128] ss:$16 sps:$4 sm:$0xff]   ;;  %v1544_v40 = vld [vmem:[%s2260_s1 + $0x144] ss:$16 sps:$4 sm:$0xff]   ;;  %v1546_v41 = vld [vmem:[%s2260_s1 + $0x14c] ss:$16 sps:$4 sm:$0xff]  }
   0xf   :  { %890 = vmatpush1.bf16.msra.mxu0 %v1506_v14  ;;  %1016 = vmatpush1.bf16.msra.mxu1 %v1507_v15  ;;  %v1548_v42 = vld [vmem:[%s2260_s1 + $0x140] ss:$16 sps:$4 sm:$0xff]   ;;  %v1549_v43 = vld [vmem:[%s2260_s1 + $0x148] ss:$16 sps:$4 sm:$0xff]   ;;  %v1550_v44 = vld [vmem:[%s2260_s1 + $0x164] ss:$16 sps:$4 sm:$0xff]  }
  0x10   :  { %891 = vmatprep.subr.bf16.mxu0 %v1508_v16  ;;  %1017 = vmatprep.subr.bf16.mxu1 %v1510_v17  ;;  %v1552_v45 = vld [vmem:[%s2260_s1 + $0x16c] ss:$16 sps:$4 sm:$0xff]   ;;  %v1554_v46 = vld [vmem:[%s2260_s1 + $0x160] ss:$16 sps:$4 sm:$0xff]   ;;  %v1555_v47 = vld [vmem:[%s2260_s1 + $0x168] ss:$16 sps:$4 sm:$0xff]  }
  0x11   :  { %v1582_v48 = vld [vmem:[%s2261_s0 + $0x4] ss:$16 sps:$4 sm:$0xff]   ;;  %v1558_v50 = vld [vmem:[%s2260_s1 + $0x18c] ss:$16 sps:$4 sm:$0xff]   ;;  %v1560_v51 = vld [vmem:[%s2260_s1 + $0x180] ss:$16 sps:$4 sm:$0xff]  }
  0x12   :  { %v1556_v49 = vld [vmem:[%s2260_s1 + $0x184] ss:$16 sps:$4 sm:$0xff]   ;;  %915 = vmatprep.mubr.bf16.mxu0 %v1582_v48  ;;  %1041 = vmatprep.mubr.bf16.mxu1 %v1582_v48  ;;  %v1561_v52 = vld [vmem:[%s2260_s1 + $0x188] ss:$16 sps:$4 sm:$0xff]   ;;  %v1564_v54 = vld [vmem:[%s2260_s1 + $0x1ac] ss:$16 sps:$4 sm:$0xff]  }
  0x13   :  { %892 = vmatpush1.bf16.msra.mxu0 %v1512_v18  ;;  %1018 = vmatpush1.bf16.msra.mxu1 %v1513_v19  ;;  %v1562_v53 = vld [vmem:[%s2260_s1 + $0x1a4] ss:$16 sps:$4 sm:$0xff]   ;;  %v1566_v55 = vld [vmem:[%s2260_s1 + $0x1a0] ss:$16 sps:$4 sm:$0xff]   ;;  %v1567_v56 = vld [vmem:[%s2260_s1 + $0x1a8] ss:$16 sps:$4 sm:$0xff]  }
  0x14   :  { %893 = vmatprep.subr.bf16.mxu0 %v1514_v20  ;;  %1019 = vmatprep.subr.bf16.mxu1 %v1516_v21  ;;  %v1568_v57 = vld [vmem:[%s2260_s1 + $0x1c4] ss:$16 sps:$4 sm:$0xff]   ;;  %v1570_v58 = vld [vmem:[%s2260_s1 + $0x1cc] ss:$16 sps:$4 sm:$0xff]   ;;  %v1572_v59 = vld [vmem:[%s2260_s1 + $0x1c0] ss:$16 sps:$4 sm:$0xff]  }
  0x15   :  { %v1573_v60 = vld [vmem:[%s2260_s1 + $0x1c8] ss:$16 sps:$4 sm:$0xff]   ;;  %v1574_v61 = vld [vmem:[%s2260_s1 + $0x1e4] ss:$16 sps:$4 sm:$0xff]   ;;  %v1576_v62 = vld [vmem:[%s2260_s1 + $0x1ec] ss:$16 sps:$4 sm:$0xff]  }
  0x16   :  { %v1578_v63 = vld [vmem:[%s2260_s1 + $0x1e0] ss:$16 sps:$4 sm:$0xff]   ;;  %v1579_v0 = vld [vmem:[%s2260_s1 + $0x1e8] ss:$16 sps:$4 sm:$0xff]   ;;  %v1585_v1 = vld [vmem:[%s2260_s1 + $0x204] ss:$16 sps:$4 sm:$0xff]  }
  0x17   :  { %894 = vmatpush1.bf16.msra.mxu0 %v1518_v22  ;;  %1020 = vmatpush1.bf16.msra.mxu1 %v1519_v23  ;;  %v1588_v2 = vld [vmem:[%s2260_s1 + $0x20c] ss:$16 sps:$4 sm:$0xff]   ;;  %v1580_v3 = vld [vmem:[%s2261_s0] ss:$16 sps:$4 sm:$0xff]   ;;  %v1586_v5 = vld [vmem:[%s2260_s1 + $0x208] ss:$16 sps:$4 sm:$0xff]  }
  0x18   :  { %895 = vmatprep.subr.bf16.mxu0 %v1520_v24  ;;  %1021 = vmatprep.subr.bf16.mxu1 %v1522_v25  ;;  %v1583_v4 = vld [vmem:[%s2260_s1 + $0x200] ss:$16 sps:$4 sm:$0xff]   ;;  %v1591_v6 = vld [vmem:[%s2260_s1 + $0x224] ss:$16 sps:$4 sm:$0xff]   ;;  %v1594_v7 = vld [vmem:[%s2260_s1 + $0x22c] ss:$16 sps:$4 sm:$0xff]  }
  0x19   :  { %v1589_v8 = vld [vmem:[%s2260_s1 + $0x220] ss:$16 sps:$4 sm:$0xff]   ;;  %v1592_v9 = vld [vmem:[%s2260_s1 + $0x228] ss:$16 sps:$4 sm:$0xff]   ;;  %v1597_v10 = vld [vmem:[%s2260_s1 + $0x244] ss:$16 sps:$4 sm:$0xff]  }
  0x1a   :  { %v1600_v11 = vld [vmem:[%s2260_s1 + $0x24c] ss:$16 sps:$4 sm:$0xff]   ;;  %v1595_v12 = vld [vmem:[%s2260_s1 + $0x240] ss:$16 sps:$4 sm:$0xff]   ;;  %v1598_v13 = vld [vmem:[%s2260_s1 + $0x248] ss:$16 sps:$4 sm:$0xff]  }
  0x1b   :  { %896 = vmatpush1.bf16.msra.mxu0 %v1524_v26  ;;  %1022 = vmatpush1.bf16.msra.mxu1 %v1525_v27  ;;  %v1603_v14 = vld [vmem:[%s2260_s1 + $0x264] ss:$16 sps:$4 sm:$0xff]   ;;  %v1606_v15 = vld [vmem:[%s2260_s1 + $0x26c] ss:$16 sps:$4 sm:$0xff]   ;;  %v1601_v16 = vld [vmem:[%s2260_s1 + $0x260] ss:$16 sps:$4 sm:$0xff]  }
  0x1c   :  { %897 = vmatprep.subr.bf16.mxu0 %v1526_v28  ;;  %1023 = vmatprep.subr.bf16.mxu1 %v1528_v29  ;;  %v1604_v17 = vld [vmem:[%s2260_s1 + $0x268] ss:$16 sps:$4 sm:$0xff]   ;;  %v1609_v18 = vld [vmem:[%s2260_s1 + $0x284] ss:$16 sps:$4 sm:$0xff]   ;;  %v1612_v19 = vld [vmem:[%s2260_s1 + $0x28c] ss:$16 sps:$4 sm:$0xff]  }
  0x1d   :  { %v1655_v20 = vld [vmem:[%s2261_s0 + $0x24] ss:$16 sps:$4 sm:$0xff]   ;;  %v1657_v21 = vld [vmem:[%s2261_s0 + $0x20] ss:$16 sps:$4 sm:$0xff]   ;;  %v1610_v23 = vld [vmem:[%s2260_s1 + $0x288] ss:$16 sps:$4 sm:$0xff]  }
  0x1e   :  { %v1607_v22 = vld [vmem:[%s2260_s1 + $0x280] ss:$16 sps:$4 sm:$0xff]   ;;  %v1615_v24 = vld [vmem:[%s2260_s1 + $0x2a4] ss:$16 sps:$4 sm:$0xff]   ;;  %v1618_v25 = vld [vmem:[%s2260_s1 + $0x2ac] ss:$16 sps:$4 sm:$0xff]  }
  0x1f   :  { %898 = vmatpush1.bf16.msra.mxu0 %v1530_v30  ;;  %1024 = vmatpush1.bf16.msra.mxu1 %v1531_v31  ;;  %v1613_v26 = vld [vmem:[%s2260_s1 + $0x2a0] ss:$16 sps:$4 sm:$0xff]   ;;  %v1616_v27 = vld [vmem:[%s2260_s1 + $0x2a8] ss:$16 sps:$4 sm:$0xff]   ;;  %v1670_v28 = vld [vmem:[%s2261_s0 + $0x44] ss:$16 sps:$4 sm:$0xff]  }
  0x20   :  { %899 = vmatprep.subr.bf16.mxu0 %v1532_v32  ;;  %1025 = vmatprep.subr.bf16.mxu1 %v1534_v33  ;;  %v1672_v29 = vld [vmem:[%s2261_s0 + $0x40] ss:$16 sps:$4 sm:$0xff]   ;;  %v1621_v30 = vld [vmem:[%s2260_s1 + $0x2c4] ss:$16 sps:$4 sm:$0xff]   ;;  %v1624_v31 = vld [vmem:[%s2260_s1 + $0x2cc] ss:$16 sps:$4 sm:$0xff]  }
  0x21   :  { %v1619_v32 = vld [vmem:[%s2260_s1 + $0x2c0] ss:$16 sps:$4 sm:$0xff]   ;;  %v1622_v33 = vld [vmem:[%s2260_s1 + $0x2c8] ss:$16 sps:$4 sm:$0xff]   ;;  %v1648_v48 = vld [vmem:[%s2260_s1 + $0x34c] ss:$16 sps:$4 sm:$0xff]  }
  0x23   :  { %900 = vmatpush1.bf16.msra.mxu0 %v1536_v34  ;;  %1026 = vmatpush1.bf16.msra.mxu1 %v1537_v35  ;;  %v1627_v34 = vld [vmem:[%s2260_s1 + $0x2e4] ss:$16 sps:$4 sm:$0xff]   ;;  %v1630_v35 = vld [vmem:[%s2260_s1 + $0x2ec] ss:$16 sps:$4 sm:$0xff]  }
  0x24   :  { %901 = vmatprep.subr.bf16.mxu0 %v1538_v36  ;;  %1027 = vmatprep.subr.bf16.mxu1 %v1540_v37  ;;  %v1687_v36 = vld [vmem:[%s2261_s0 + $0xc] ss:$16 sps:$4 sm:$0xff]   ;;  %v1625_v37 = vld [vmem:[%s2260_s1 + $0x2e0] ss:$16 sps:$4 sm:$0xff]  }
  0x27   :  { %902 = vmatpush1.bf16.msra.mxu0 %v1542_v38  ;;  %1028 = vmatpush1.bf16.msra.mxu1 %v1543_v39  ;;  %v1628_v38 = vld [vmem:[%s2260_s1 + $0x2e8] ss:$16 sps:$4 sm:$0xff]   ;;  %v1633_v39 = vld [vmem:[%s2260_s1 + $0x304] ss:$16 sps:$4 sm:$0xff]  }
  0x28   :  { %903 = vmatprep.subr.bf16.mxu0 %v1544_v40  ;;  %1029 = vmatprep.subr.bf16.mxu1 %v1546_v41  ;;  %v1636_v40 = vld [vmem:[%s2260_s1 + $0x30c] ss:$16 sps:$4 sm:$0xff]   ;;  %v1631_v41 = vld [vmem:[%s2260_s1 + $0x300] ss:$16 sps:$4 sm:$0xff]  }
  0x2b   :  { %904 = vmatpush1.bf16.msra.mxu0 %v1548_v42  ;;  %1030 = vmatpush1.bf16.msra.mxu1 %v1549_v43  ;;  %v1634_v42 = vld [vmem:[%s2260_s1 + $0x308] ss:$16 sps:$4 sm:$0xff]   ;;  %v1639_v43 = vld [vmem:[%s2260_s1 + $0x324] ss:$16 sps:$4 sm:$0xff]  }
  0x2c   :  { %905 = vmatprep.subr.bf16.mxu0 %v1550_v44  ;;  %1031 = vmatprep.subr.bf16.mxu1 %v1552_v45  ;;  %v1642_v44 = vld [vmem:[%s2260_s1 + $0x32c] ss:$16 sps:$4 sm:$0xff]   ;;  %v1637_v45 = vld [vmem:[%s2260_s1 + $0x320] ss:$16 sps:$4 sm:$0xff]  }
  0x2f   :  { %906 = vmatpush1.bf16.msra.mxu0 %v1554_v46  ;;  %1032 = vmatpush1.bf16.msra.mxu1 %v1555_v47  ;;  %v1640_v46 = vld [vmem:[%s2260_s1 + $0x328] ss:$16 sps:$4 sm:$0xff]   ;;  %v1645_v47 = vld [vmem:[%s2260_s1 + $0x344] ss:$16 sps:$4 sm:$0xff]  }
  0x30   :  { %907 = vmatprep.subr.bf16.mxu0 %v1556_v49  ;;  %1033 = vmatprep.subr.bf16.mxu1 %v1558_v50  ;;  %v1643_v49 = vld [vmem:[%s2260_s1 + $0x340] ss:$16 sps:$4 sm:$0xff]   ;;  %v1646_v50 = vld [vmem:[%s2260_s1 + $0x348] ss:$16 sps:$4 sm:$0xff]  }
  0x33   :  { %908 = vmatpush1.bf16.msra.mxu0 %v1560_v51  ;;  %1034 = vmatpush1.bf16.msra.mxu1 %v1561_v52  ;;  %v1651_v51 = vld [vmem:[%s2260_s1 + $0x364] ss:$16 sps:$4 sm:$0xff]   ;;  %v1654_v52 = vld [vmem:[%s2260_s1 + $0x36c] ss:$16 sps:$4 sm:$0xff]  }
  0x34   :  { %909 = vmatprep.subr.bf16.mxu0 %v1562_v53  ;;  %1035 = vmatprep.subr.bf16.mxu1 %v1564_v54  ;;  %v1649_v53 = vld [vmem:[%s2260_s1 + $0x360] ss:$16 sps:$4 sm:$0xff]   ;;  %v1652_v54 = vld [vmem:[%s2260_s1 + $0x368] ss:$16 sps:$4 sm:$0xff]  }
  0x37   :  { %910 = vmatpush1.bf16.msra.mxu0 %v1566_v55  ;;  %1036 = vmatpush1.bf16.msra.mxu1 %v1567_v56  ;;  %v1660_v55 = vld [vmem:[%s2260_s1 + $0x384] ss:$16 sps:$4 sm:$0xff]   ;;  %v1663_v56 = vld [vmem:[%s2260_s1 + $0x38c] ss:$16 sps:$4 sm:$0xff]  }
  0x38   :  { %911 = vmatprep.subr.bf16.mxu0 %v1568_v57  ;;  %1037 = vmatprep.subr.bf16.mxu1 %v1570_v58  ;;  %v1658_v57 = vld [vmem:[%s2260_s1 + $0x380] ss:$16 sps:$4 sm:$0xff]   ;;  %v1661_v58 = vld [vmem:[%s2260_s1 + $0x388] ss:$16 sps:$4 sm:$0xff]  }
  0x3b   :  { %912 = vmatpush1.bf16.msra.mxu0 %v1572_v59  ;;  %1038 = vmatpush1.bf16.msra.mxu1 %v1573_v60  ;;  %v1666_v59 = vld [vmem:[%s2260_s1 + $0x3a4] ss:$16 sps:$4 sm:$0xff]   ;;  %v1669_v60 = vld [vmem:[%s2260_s1 + $0x3ac] ss:$16 sps:$4 sm:$0xff]  }
  0x3c   :  { %913 = vmatprep.subr.bf16.mxu0 %v1574_v61  ;;  %1039 = vmatprep.subr.bf16.mxu1 %v1576_v62  ;;  %v1664_v61 = vld [vmem:[%s2260_s1 + $0x3a0] ss:$16 sps:$4 sm:$0xff]   ;;  %v1667_v62 = vld [vmem:[%s2260_s1 + $0x3a8] ss:$16 sps:$4 sm:$0xff]  }
  0x3f   :  { %914 = vmatpush1.bf16.msra.mxu0 %v1578_v63  ;;  %1040 = vmatpush1.bf16.msra.mxu1 %v1579_v0  ;;  %v1675_v63 = vld [vmem:[%s2260_s1 + $0x3c4] ss:$16 sps:$4 sm:$0xff]   ;;  %v1678_v0 = vld [vmem:[%s2260_s1 + $0x3cc] ss:$16 sps:$4 sm:$0xff]  }
  0x40   :  { %946 = vmatprep.subr.bf16.mxu0 %v1585_v1  ;;  %1072 = vmatprep.subr.bf16.mxu1 %v1588_v2  ;;  %v1673_v1 = vld [vmem:[%s2260_s1 + $0x3c0] ss:$16 sps:$4 sm:$0xff]   ;;  %v1676_v2 = vld [vmem:[%s2260_s1 + $0x3c8] ss:$16 sps:$4 sm:$0xff]  }
  0x42   :  { %916 = vmatmul.mubr.bf16.vlgmr.msra.gmra.mrb[0].mxu0 %v1580_v3  ;;  %1042 = vmatmul.mubr.bf16.vlgmr.msra.gmra.mrb[0].mxu1 %v1580_v3  ;;  %v1681_v3 = vld [vmem:[%s2260_s1 + $0x3e4] ss:$16 sps:$4 sm:$0xff]  }
  0x43   :  { %947 = vmatpush1.bf16.msra.mxu0 %v1583_v4  ;;  %1073 = vmatpush1.bf16.msra.mxu1 %v1586_v5  ;;  %v1684_v4 = vld [vmem:[%s2260_s1 + $0x3ec] ss:$16 sps:$4 sm:$0xff]   ;;  %v1679_v5 = vld [vmem:[%s2260_s1 + $0x3e0] ss:$16 sps:$4 sm:$0xff]  }
  0x44   :  { %948 = vmatprep.subr.bf16.mxu0 %v1591_v6  ;;  %1074 = vmatprep.subr.bf16.mxu1 %v1594_v7  ;;  %v1682_v6 = vld [vmem:[%s2260_s1 + $0x3e8] ss:$16 sps:$4 sm:$0xff]  }
  0x45   :  { %925 = vmatprep.mubr.bf16.mxu0 %v1655_v20  ;;  %1051 = vmatprep.mubr.bf16.mxu1 %v1655_v20  ;;  %v1685_v7 = vld [vmem:[%s2261_s0 + $0x8] ss:$16 sps:$4 sm:$0xff]  }
  0x47   :  { %949 = vmatpush1.bf16.msra.mxu0 %v1589_v8  ;;  %1075 = vmatpush1.bf16.msra.mxu1 %v1592_v9  ;;  %v1688_v8 = vld [vmem:[%s2261_s0 + $0x2c] ss:$16 sps:$4 sm:$0xff]   ;;  %v1690_v9 = vld [vmem:[%s2261_s0 + $0x28] ss:$16 sps:$4 sm:$0xff]  }
  0x48   :  { %950 = vmatprep.subr.bf16.mxu0 %v1597_v10  ;;  %1076 = vmatprep.subr.bf16.mxu1 %v1600_v11  ;;  %v1691_v10 = vld [vmem:[%s2261_s0 + $0x4c] ss:$16 sps:$4 sm:$0xff]   ;;  %v1693_v11 = vld [vmem:[%s2261_s0 + $0x48] ss:$16 sps:$4 sm:$0xff]  }
  0x4a   :  { %926 = vmatmul.mubr.bf16.gmra.mrb[4].mxu0 %v1657_v21  ;;  %1052 = vmatmul.mubr.bf16.gmra.mrb[4].mxu1 %v1657_v21 }
  0x4b   :  { %951 = vmatpush1.bf16.msra.mxu0 %v1595_v12  ;;  %1077 = vmatpush1.bf16.msra.mxu1 %v1598_v13 }
  0x4c   :  { %952 = vmatprep.subr.bf16.mxu0 %v1603_v14  ;;  %1078 = vmatprep.subr.bf16.mxu1 %v1606_v15 }
  0x4d   :  { %935 = vmatprep.mubr.bf16.mxu0 %v1670_v28  ;;  %1061 = vmatprep.mubr.bf16.mxu1 %v1670_v28 }
  0x4f   :  { %953 = vmatpush1.bf16.msra.mxu0 %v1601_v16  ;;  %1079 = vmatpush1.bf16.msra.mxu1 %v1604_v17 }
  0x50   :  { %954 = vmatprep.subr.bf16.mxu0 %v1609_v18  ;;  %1080 = vmatprep.subr.bf16.mxu1 %v1612_v19 }
  0x52   :  { %936 = vmatmul.mubr.bf16.gmra.mrb[8].mxu0 %v1672_v29  ;;  %1062 = vmatmul.mubr.bf16.gmra.mrb[8].mxu1 %v1672_v29 }
  0x53   :  { %955 = vmatpush1.bf16.msra.mxu0 %v1607_v22  ;;  %1081 = vmatpush1.bf16.msra.mxu1 %v1610_v23 }
  0x54   :  { %956 = vmatprep.subr.bf16.mxu0 %v1615_v24  ;;  %1082 = vmatprep.subr.bf16.mxu1 %v1618_v25 }
  0x55   :  { %978 = vmatprep.mubr.bf16.mxu0 %v1687_v36  ;;  %1104 = vmatprep.mubr.bf16.mxu1 %v1687_v36 }
  0x57   :  { %957 = vmatpush1.bf16.msra.mxu0 %v1613_v26  ;;  %1083 = vmatpush1.bf16.msra.mxu1 %v1616_v27 }
  0x58   :  { %958 = vmatprep.subr.bf16.mxu0 %v1621_v30  ;;  %1084 = vmatprep.subr.bf16.mxu1 %v1624_v31 }
  0x5b   :  { %959 = vmatpush1.bf16.msra.mxu0 %v1619_v32  ;;  %1085 = vmatpush1.bf16.msra.mxu1 %v1622_v33 }
  0x5c   :  { %960 = vmatprep.subr.bf16.mxu0 %v1627_v34  ;;  %1086 = vmatprep.subr.bf16.mxu1 %v1630_v35 }
  0x5f   :  { %961 = vmatpush1.bf16.msra.mxu0 %v1625_v37  ;;  %1087 = vmatpush1.bf16.msra.mxu1 %v1628_v38 }
  0x60   :  { %962 = vmatprep.subr.bf16.mxu0 %v1633_v39  ;;  %1088 = vmatprep.subr.bf16.mxu1 %v1636_v40 }
  0x63   :  { %963 = vmatpush1.bf16.msra.mxu0 %v1631_v41  ;;  %1089 = vmatpush1.bf16.msra.mxu1 %v1634_v42 }
  0x64   :  { %964 = vmatprep.subr.bf16.mxu0 %v1639_v43  ;;  %1090 = vmatprep.subr.bf16.mxu1 %v1642_v44 }
  0x67   :  { %965 = vmatpush1.bf16.msra.mxu0 %v1637_v45  ;;  %1091 = vmatpush1.bf16.msra.mxu1 %v1640_v46 }
  0x68   :  { %966 = vmatprep.subr.bf16.mxu0 %v1645_v47  ;;  %1092 = vmatprep.subr.bf16.mxu1 %v1648_v48 }
  0x6b   :  { %967 = vmatpush1.bf16.msra.mxu0 %v1643_v49  ;;  %1093 = vmatpush1.bf16.msra.mxu1 %v1646_v50 }
  0x6c   :  { %968 = vmatprep.subr.bf16.mxu0 %v1651_v51  ;;  %1094 = vmatprep.subr.bf16.mxu1 %v1654_v52 }
  0x6f   :  { %969 = vmatpush1.bf16.msra.mxu0 %v1649_v53  ;;  %1095 = vmatpush1.bf16.msra.mxu1 %v1652_v54 }
  0x70   :  { %970 = vmatprep.subr.bf16.mxu0 %v1660_v55  ;;  %1096 = vmatprep.subr.bf16.mxu1 %v1663_v56 }
  0x73   :  { %971 = vmatpush1.bf16.msra.mxu0 %v1658_v57  ;;  %1097 = vmatpush1.bf16.msra.mxu1 %v1661_v58 }
  0x74   :  { %972 = vmatprep.subr.bf16.mxu0 %v1666_v59  ;;  %1098 = vmatprep.subr.bf16.mxu1 %v1669_v60 }
  0x77   :  { %973 = vmatpush1.bf16.msra.mxu0 %v1664_v61  ;;  %1099 = vmatpush1.bf16.msra.mxu1 %v1667_v62 }
  0x78   :  { %974 = vmatprep.subr.bf16.mxu0 %v1675_v63  ;;  %1100 = vmatprep.subr.bf16.mxu1 %v1678_v0 }
  0x7b   :  { %975 = vmatpush1.bf16.msra.mxu0 %v1673_v1  ;;  %1101 = vmatpush1.bf16.msra.mxu1 %v1676_v2 }
  0x7c   :  { %976 = vmatprep.subr.bf16.mxu0 %v1681_v3  ;;  %1102 = vmatprep.subr.bf16.mxu1 %v1684_v4 }
  0x7f   :  { %977 = vmatpush1.bf16.msra.mxu0 %v1679_v5  ;;  %1103 = vmatpush1.bf16.msra.mxu1 %v1682_v6 }
  0x82   :  { %979 = vmatmul.mubr.bf16.vlgmr.msra.gmra.mrb[0].mxu0 %v1685_v7  ;;  %1105 = vmatmul.mubr.bf16.vlgmr.msra.gmra.mrb[0].mxu1 %v1685_v7 }
  0x83   :  { %988 = vmatprep.mubr.bf16.mxu0 %v1688_v8  ;;  %1114 = vmatprep.mubr.bf16.mxu1 %v1688_v8 }
  0x8a   :  { %989 = vmatmul.mubr.bf16.gmra.mrb[4].mxu0 %v1690_v9  ;;  %1115 = vmatmul.mubr.bf16.gmra.mrb[4].mxu1 %v1690_v9 }
  0x8b   :  { %998 = vmatprep.mubr.bf16.mxu0 %v1691_v10  ;;  %1124 = vmatprep.mubr.bf16.mxu1 %v1691_v10 }
  0x92   :  { %999 = vmatmul.mubr.bf16.gmra.mrb[8].mxu0 %v1693_v11  ;;  %1125 = vmatmul.mubr.bf16.gmra.mrb[8].mxu1 %v1693_v11 }
 0x155   :  { %v980_v12 = vpop.f32.mrb[0].mxu0  ;;  %v1106_v13 = vpop.f32.mrb[0].mxu1 }
 0x156   :  { %v1135_v14 = vmul.f32 %v980_v12, %v980_v12  ;;  %v1141_v15 = vmul.f32 %v1106_v13, %v1106_v13  ;;  %v982_v16 = vpop.f32.mrb[1].mxu0  ;;  %v1108_v17 = vpop.f32.mrb[1].mxu1 }
 0x157   :  { %v1136_v18 = vmul.f32 %v982_v16, %v982_v16  ;;  %v1142_v19 = vmul.f32 %v1108_v17, %v1108_v17  ;;  %v984_v20 = vpop.f32.mrb[2].mxu0  ;;  %v1110_v21 = vpop.f32.mrb[2].mxu1 }
 0x158   :  { %v1147_v22 = vadd.f32 %v1141_v15, %v1135_v14  ;;  %v1137_v23 = vmul.f32 %v984_v20, %v984_v20  ;;  %v1143_v24 = vmul.f32 %v1110_v21, %v1110_v21  ;;  %v986_v25 = vpop.f32.mrb[3].mxu0  ;;  %v1112_v26 = vpop.f32.mrb[3].mxu1 }
 0x159   :  { %v1148_v27 = vadd.f32 %v1142_v19, %v1136_v18  ;;  %v1138_v28 = vmul.f32 %v986_v25, %v986_v25  ;;  %v1144_v29 = vmul.f32 %v1112_v26, %v1112_v26 }
 0x15a   :  { %v1153_v30 = vmax.f32 %v1147_v22, 1e-08  ;;  %v1149_v31 = vadd.f32 %v1143_v24, %v1137_v23 }
 0x15b   :  { %v1154_v32 = vmax.f32 %v1148_v27, 1e-08  ;;  %v1150_v33 = vadd.f32 %v1144_v29, %v1138_v28 }
 0x15c   :  { %1694 = vrcp.f32 %v1153_v30  ;;  %v1155_v40 = vmax.f32 %v1149_v31, 1e-08 }
 0x15d   :  { %1696 = vrcp.f32 %v1154_v32  ;;  %v990_v34 = vpop.f32.mrb[4].mxu0  ;;  %v1116_v35 = vpop.f32.mrb[4].mxu1  ;;  %v2165_v45 = vmax.f32 %v1150_v33, 1e-08 }
 0x15e   :  { %v1139_v36 = vmul.f32 %v990_v34, %v990_v34  ;;  %v1145_v37 = vmul.f32 %v1116_v35, %v1116_v35  ;;  %v992_v38 = vpop.f32.mrb[5].mxu0  ;;  %v1118_v39 = vpop.f32.mrb[5].mxu1  ;;  %1698 = vrcp.f32 %v1155_v40 }
 0x15f   :  { %v1140_v41 = vmul.f32 %v992_v38, %v992_v38  ;;  %v1146_v42 = vmul.f32 %v1118_v39, %v1118_v39  ;;  %v994_v43 = vpop.f32.mrb[6].mxu0  ;;  %v1120_v44 = vpop.f32.mrb[6].mxu1  ;;  %1700 = vrcp.f32 %v2165_v45 }
 0x160   :  { %v1151_v46 = vadd.f32 %v1145_v37, %v1139_v36  ;;  %v1159_v47 = vmul.f32 %v994_v43, %v994_v43  ;;  %v1165_v48 = vmul.f32 %v1120_v44, %v1120_v44  ;;  %v996_v49 = vpop.f32.mrb[7].mxu0  ;;  %v1122_v50 = vpop.f32.mrb[7].mxu1 }
 0x161   :  { %v1152_v51 = vadd.f32 %v1146_v42, %v1140_v41  ;;  %v1160_v52 = vmul.f32 %v996_v49, %v996_v49  ;;  %v1166_v53 = vmul.f32 %v1122_v50, %v1122_v50 }
 0x162   :  { %v1157_v54 = vmax.f32 %v1151_v46, 1e-08  ;;  %v1171_v55 = vadd.f32 %v1165_v48, %v1159_v47 }
 0x163   :  { %v1172_v56 = vadd.f32 %v1166_v53, %v1160_v52  ;;  %v2177_v13 = vmax.f32 %v1152_v51, 1e-08 }
 0x164   :  { %v1177_v57 = vmax.f32 %v1171_v55, 1e-08  ;;  %1702 = vrcp.f32 %v1157_v54 }
 0x165   :  { %v1178_v58 = vmax.f32 %v1172_v56, 1e-08  ;;  %v1000_v59 = vpop.f32.mrb[8].mxu0  ;;  %v1126_v60 = vpop.f32.mrb[8].mxu1 }
 0x166   :  { %v1695_v61 = vpop.eup %1694  ;;  %v2168_v62 = vadd.f32 %v1177_v57, %v1153_v30  ;;  %v2170_v63 = vmul.f32 %v1177_v57, %v1153_v30  ;;  %v1161_v0 = vmul.f32 %v1000_v59, %v1000_v59  ;;  %v1167_v1 = vmul.f32 %v1126_v60, %v1126_v60  ;;  %v1002_v2 = vpop.f32.mrb[9].mxu0 }
 0x167   :  { %v1128_v3 = vpop.f32.mrb[9].mxu1  ;;  %v1697_v4 = vpop.eup %1696  ;;  %v1189_v5 = vmul.f32 %v1695_v61, %v1177_v57  ;;  %v2172_v6 = vadd.f32 %v1178_v58, %v1154_v32  ;;  %v2174_v7 = vmul.f32 %v1178_v58, %v1154_v32  ;;  %v1162_v10 = vmul.f32 %v1002_v2, %v1002_v2 }
 0x168   :  { %v1004_v8 = vpop.f32.mrb[10].mxu0  ;;  %v1130_v9 = vpop.f32.mrb[10].mxu1  ;;  %1704 = vrsqrt.f32 %v2170_v63  ;;  %v1190_v14 = vmul.f32 %v1697_v4, %v1178_v58  ;;  %v1173_v15 = vadd.f32 %v1167_v1, %v1161_v0  ;;  %v1168_v16 = vmul.f32 %v1128_v3, %v1128_v3 }
 0x169   :  { %v1006_v11 = vpop.f32.mrb[11].mxu0  ;;  %v1132_v12 = vpop.f32.mrb[11].mxu1  ;;  %1706 = vlog2.f32 %v1189_v5  ;;  %v1163_v17 = vmul.f32 %v1004_v8, %v1004_v8  ;;  %v1169_v18 = vmul.f32 %v1130_v9, %v1130_v9  ;;  %vm1233_vm0 = vcmp.eq.f32.partialorder %v2170_v63, inf }
 0x16a   :  { %1708 = vrsqrt.f32 %v2174_v7  ;;  %v1164_v19 = vmul.f32 %v1006_v11, %v1006_v11  ;;  %v1179_v20 = vmax.f32 %v1173_v15, 1e-08  ;;  %v1174_v21 = vadd.f32 %v1168_v16, %v1162_v10  ;;  %v1699_v23 = vpop.eup %1698 }
 0x16b   :  { %1710 = vlog2.f32 %v1190_v14  ;;  %v1170_v22 = vmul.f32 %v1132_v12, %v1132_v12  ;;  %v1175_v24 = vadd.f32 %v1169_v18, %v1163_v17  ;;  %v1701_v25 = vpop.eup %1700  ;;  %vm1235_vm1 = vcmp.eq.f32.partialorder %v2170_v63, 0.0 }
 0x16c   :  { %1712 = vrcp.f32 %v2177_v13  ;;  %v1191_v26 = vmul.f32 %v1699_v23, %v1179_v20  ;;  %v2181_v27 = vadd.f32 %v1179_v20, %v1155_v40  ;;  %v2183_v28 = vmul.f32 %v1179_v20, %v1155_v40 }
 0x16d   :  { %v1302_v29 = vadd.f32 %v1179_v20, %v1177_v57  ;;  %v1180_v31 = vmax.f32 %v1174_v21, 1e-08  ;;  %v1181_v32 = vmax.f32 %v1175_v24, 1e-08  ;;  %v1176_v33 = vadd.f32 %v1170_v22, %v1164_v19 }
 0x16e   :  { %v1703_v30 = vpop.eup %1702  ;;  %1714 = vlog2.f32 %v1191_v26  ;;  %v1236_v46 = vand.u32 2147483648, %v2170_v63  ;;  %vm1240_vm2 = vcmp.eq.f32.partialorder %v2174_v7, inf  ;;  %v1243_v51 = vand.u32 2147483648, %v2174_v7 }
 0x16f   :  { %1716 = vrsqrt.f32 %v2183_v28  ;;  %v1192_v34 = vmul.f32 %v1701_v25, %v1180_v31  ;;  %v2187_v35 = vadd.f32 %v1180_v31, %v2165_v45  ;;  %v2190_v36 = vmul.f32 %v1180_v31, %v2165_v45 }
 0x170   :  { %v1304_v38 = vadd.f32 %v1180_v31, %v1178_v58  ;;  %v1193_v39 = vmul.f32 %v1703_v30, %v1181_v32  ;;  %v2192_v40 = vadd.f32 %v1181_v32, %v1157_v54  ;;  %v2194_v41 = vmul.f32 %v1181_v32, %v1157_v54 }
 0x171   :  { %1718 = vlog2.f32 %v1192_v34  ;;  %vm1242_vm3 = vcmp.eq.f32.partialorder %v2174_v7, 0.0  ;;  %v1303_v55 = vadd.f32 %v1302_v29, %v1181_v32  ;;  %vm1247_vm4 = vcmp.eq.f32.partialorder %v2183_v28, inf }
 0x172   :  { %v1705_v37 = vpop.eup %1704  ;;  %1720 = vrsqrt.f32 %v2190_v36  ;;  %vm1249_vm5 = vcmp.eq.f32.partialorder %v2183_v28, 0.0  ;;  %v1182_v57 = vmax.f32 %v1176_v33, 1e-08  ;;  %v1250_v61 = vand.u32 2147483648, %v2183_v28 }
 0x173   :  { %v1707_v42 = vpop.eup %1706  ;;  %v1232_v43 = vmul.f32 %v1705_v37, %v2170_v63  ;;  %1722 = vlog2.f32 %v1193_v39  ;;  %vm1254_vm6 = vcmp.eq.f32.partialorder %v2190_v36, inf  ;;  %vm1256_vm7 = vcmp.eq.f32.partialorder %v2190_v36, 0.0 }
 0x174   :  { %v1709_v44 = vpop.eup %1708  ;;  %v1196_v49 = vmul.f32 0.6931472, %v1707_v42  ;;  %1724 = vrsqrt.f32 %v2194_v41  ;;  %v2213_v2 = vadd.f32 %v1182_v57, %v2177_v13  ;;  %v2216_v3 = vmul.f32 %v1182_v57, %v2177_v13 }
 0x175   :  { %v1234_v45 = vsel %vm1233_vm0, %v2170_v63, %v1232_v43  ;;  %v1239_v47 = vmul.f32 %v1709_v44, %v2174_v7  ;;  %v1711_v48 = vpop.eup %1710  ;;  %v1257_v9 = vand.u32 2147483648, %v2190_v36  ;;  %vm1261_vm8 = vcmp.eq.f32.partialorder %v2194_v41, inf }
 0x176   :  { %v1237_v50 = vsel %vm1235_vm1, %v1236_v46, %v1234_v45  ;;  %v1713_v52 = vpop.eup %1712  ;;  %v1198_v59 = vmul.f32 0.6931472, %v1711_v48  ;;  %v1207_v0 = vand.u32 2147483647, %v1196_v49  ;;  %v1264_v25 = vand.u32 2147483648, %v2194_v41 }
 0x177   :  { %v1273_v53 = vmul.f32 2.0, %v1237_v50  ;;  %v1241_v54 = vsel %vm1240_vm2, %v2174_v7, %v1239_v47  ;;  %v1194_v1 = vmul.f32 %v1713_v52, %v1182_v57  ;;  %vm1263_vm9 = vcmp.eq.f32.partialorder %v2194_v41, 0.0 }
 0x178   :  { %v1244_v56 = vsel %vm1242_vm3, %v1243_v51, %v1241_v54  ;;  %v1715_v63 = vpop.eup %1714  ;;  %v1208_v11 = vand.u32 2147483647, %v1198_v59  ;;  %v1213_v15 = vmul.f32 0.5, %v1207_v0  ;;  %vm1268_vm10 = vcmp.eq.f32.partialorder %v2216_v3, inf }
 0x179   :  { %v1279_v58 = vsub.f32 %v2168_v62, %v1273_v53  ;;  %v1274_v60 = vmul.f32 2.0, %v1244_v56  ;;  %v1717_v4 = vpop.eup %1716  ;;  %v1200_v7 = vmul.f32 0.6931472, %v1715_v63  ;;  %v1305_v62 = vadd.f32 %v1304_v38, %v1182_v57 }
 0x17a   :  { %v1246_v8 = vmul.f32 %v1717_v4, %v2183_v28  ;;  %1726 = vlog2.f32 %v1194_v1  ;;  %v1214_v26 = vmul.f32 0.5, %v1208_v11  ;;  %vm1270_vm11 = vcmp.eq.f32.partialorder %v2216_v3, 0.0 }
 0x17b   :  { %v1280_v5 = vsub.f32 %v2172_v6, %v1274_v60  ;;  %v1719_v10 = vpop.eup %1718  ;;  %v1209_v12 = vand.u32 2147483647, %v1200_v7  ;;  %1728 = vrsqrt.f32 %v2216_v3  ;;  %v1306_v13 = vadd.f32 %v1305_v62, %v1303_v55 }
 0x17c   :  { %v1721_v14 = vpop.eup %1720  ;;  %v1248_v6 = vsel %vm1247_vm4, %v2183_v28, %v1246_v8  ;;  %v1202_v16 = vmul.f32 0.6931472, %v1719_v10 }
 0x17d   :  { %v1723_v17 = vpop.eup %1722  ;;  %v1215_v18 = vmul.f32 0.5, %v1209_v12  ;;  %v1251_v19 = vsel %vm1249_vm5, %v1250_v61, %v1248_v6  ;;  %v1253_v20 = vmul.f32 %v1721_v14, %v2190_v36  ;;  %1308 = vst [vmem:[%s2262_s2 + $0x10] sm:$0xff] %v1306_v13 }
 0x17e   :  { %v1725_v21 = vpop.eup %1724  ;;  %v1275_v22 = vmul.f32 2.0, %v1251_v19  ;;  %v1210_v23 = vand.u32 2147483647, %v1202_v16  ;;  %v1204_v24 = vmul.f32 0.6931472, %v1723_v17 }
 0x17f   :  { %v1286_v29 = vadd.f32 %v1215_v18, %v1213_v15  ;;  %v1255_v30 = vsel %vm1254_vm6, %v2190_v36, %v1253_v20  ;;  %v1260_v31 = vmul.f32 %v1725_v21, %v2194_v41 }
 0x180   :  { %v1281_v28 = vsub.f32 %v2181_v27, %v1275_v22  ;;  %v1216_v32 = vmul.f32 0.5, %v1210_v23  ;;  %v1258_v33 = vsel %vm1256_vm7, %v1257_v9, %v1255_v30  ;;  %v1211_v34 = vand.u32 2147483647, %v1204_v24 }
 0x181   :  { %v1276_v37 = vmul.f32 2.0, %v1258_v33  ;;  %v1262_v38 = vsel %vm1261_vm8, %v2194_v41, %v1260_v31  ;;  %v1271_v41 = vand.u32 2147483648, %v2216_v3 }
 0x182   :  { %v1294_v39 = vadd.f32 %v1281_v28, %v1279_v58  ;;  %v1288_v42 = vadd.f32 %v1216_v32, %v1214_v26  ;;  %v1217_v43 = vmul.f32 0.5, %v1211_v34  ;;  %v1265_v44 = vsel %vm1263_vm9, %v1264_v25, %v1262_v38 }
 0x183   :  { %v1282_v46 = vsub.f32 %v2187_v35, %v1276_v37  ;;  %v1277_v45 = vmul.f32 2.0, %v1265_v44 }
 0x184   :  { %v1727_v27 = vpop.eup %1726  ;;  %v1287_v47 = vadd.f32 %v1286_v29, %v1217_v43 }
 0x185   :  { %v1729_v48 = vpop.eup %1728  ;;  %v1296_v36 = vadd.f32 %v1282_v46, %v1280_v5  ;;  %v1283_v49 = vsub.f32 %v2192_v40, %v1277_v45  ;;  %v1206_v50 = vmul.f32 0.6931472, %v1727_v27 }
 0x186   :  { %v1267_v51 = vmul.f32 %v1729_v48, %v2216_v3 }
 0x187   :  { %v1295_v52 = vadd.f32 %v1294_v39, %v1283_v49  ;;  %v1212_v53 = vand.u32 2147483647, %v1206_v50 }
 0x188   :  { %v1269_v54 = vsel %vm1268_vm10, %v2216_v3, %v1267_v51 }
 0x189   :  { %v1218_v35 = vmul.f32 0.5, %v1212_v53  ;;  %v1272_v55 = vsel %vm1270_vm11, %v1271_v41, %v1269_v54 }
 0x18a   :  { %v1278_v56 = vmul.f32 2.0, %v1272_v55 }
 0x18b   :  { %v1289_v57 = vadd.f32 %v1288_v42, %v1218_v35 }
 0x18c   :  { %v1284_v58 = vsub.f32 %v2213_v2, %v1278_v56 }
 0x18d   :  { %v1290_v40 = vadd.f32 %v1289_v57, %v1287_v47 }
 0x18e   :  { %v1297_v59 = vadd.f32 %v1296_v36, %v1284_v58 }
 0x18f   :  { %1292 = vst [vmem:[%s2262_s2] sm:$0xff] %v1290_v40 }
 0x190   :  { %v1298_v60 = vadd.f32 %v1297_v59, %v1295_v52 }
 0x192   :  { %1300 = vst [vmem:[%s2262_s2 + $0x8] sm:$0xff] %v1298_v60 }

// kernel: _forward_impl.3
= control target key start
LH: loop header
LB: loop body
LE: loop exit
PB: predicated region body
PF: predicated region fallthrough
CT: control target
= control target key end

     0   :  { %s899_s1 = inlined_call_operand.vmem [shape: bf16[256,256], index: 1, kind: input, shape index: {}]   ;;  %s900_s0 = inlined_call_operand.vmem [shape: bf16[80,256], index: 0, kind: input, shape index: {}]   ;;  %s901_s2 = inlined_call_operand.vmem [shape: f32[24,128], index: 2, kind: output, shape index: {}]  }
   0x1   :  { %v609_v0 = vld [vmem:[%s899_s1 + $0x4] ss:$8 sps:$4 sm:$0xff]   ;;  %v611_v1 = vld [vmem:[%s899_s1] ss:$8 sps:$4 sm:$0xff]   ;;  %v612_v2 = vld [vmem:[%s899_s1 + $0x14] ss:$8 sps:$4 sm:$0xff]  }
   0x2   :  { %295 = vmatprep.subr.bf16.mxu0 %v609_v0  ;;  %576 = vmatprep.subr.bf16.mxu1 %v609_v0  ;;  %v614_v3 = vld [vmem:[%s899_s1 + $0x10] ss:$8 sps:$4 sm:$0xff]   ;;  %v615_v4 = vld [vmem:[%s899_s1 + $0x24] ss:$8 sps:$4 sm:$0xff]   ;;  %v617_v5 = vld [vmem:[%s899_s1 + $0x20] ss:$8 sps:$4 sm:$0xff]  }
   0x3   :  { %296 = vmatpush1.bf16.msra.mxu0 %v611_v1  ;;  %592 = vmatpush1.bf16.msra.mxu1 %v611_v1  ;;  %v618_v6 = vld [vmem:[%s899_s1 + $0x34] ss:$8 sps:$4 sm:$0xff]   ;;  %v620_v7 = vld [vmem:[%s899_s1 + $0x30] ss:$8 sps:$4 sm:$0xff]   ;;  %v621_v8 = vld [vmem:[%s899_s1 + $0x44] ss:$8 sps:$4 sm:$0xff]  }
   0x4   :  { %297 = vmatprep.subr.bf16.mxu0 %v612_v2  ;;  %577 = vmatprep.subr.bf16.mxu1 %v612_v2  ;;  %v623_v9 = vld [vmem:[%s899_s1 + $0x40] ss:$8 sps:$4 sm:$0xff]   ;;  %v624_v10 = vld [vmem:[%s899_s1 + $0x54] ss:$8 sps:$4 sm:$0xff]   ;;  %v626_v11 = vld [vmem:[%s899_s1 + $0x50] ss:$8 sps:$4 sm:$0xff]  }
   0x5   :  { %v627_v12 = vld [vmem:[%s899_s1 + $0x64] ss:$8 sps:$4 sm:$0xff]   ;;  %v629_v14 = vld [vmem:[%s899_s1 + $0x60] ss:$8 sps:$4 sm:$0xff]   ;;  %v662_v15 = vld [vmem:[%s900_s0 + $0x34] ss:$8 sps:$4 sm:$0xff]  }
   0x6   :  { %v659_v13 = vld [vmem:[%s900_s0 + $0x4] ss:$8 sps:$4 sm:$0xff]   ;;  %v630_v16 = vld [vmem:[%s899_s1 + $0x74] ss:$8 sps:$4 sm:$0xff]   ;;  %357 = vmatprep.mubr.bf16.mxu1 %v662_v15  ;;  %v632_v17 = vld [vmem:[%s899_s1 + $0x70] ss:$8 sps:$4 sm:$0xff]  }
   0x7   :  { %298 = vmatpush1.bf16.msra.mxu0 %v614_v3  ;;  %593 = vmatpush1.bf16.msra.mxu1 %v614_v3  ;;  %v633_v18 = vld [vmem:[%s899_s1 + $0x84] ss:$8 sps:$4 sm:$0xff]   ;;  %v635_v19 = vld [vmem:[%s899_s1 + $0x80] ss:$8 sps:$4 sm:$0xff]   ;;  %v636_v20 = vld [vmem:[%s899_s1 + $0x94] ss:$8 sps:$4 sm:$0xff]  }
   0x8   :  { %299 = vmatprep.subr.bf16.mxu0 %v615_v4  ;;  %578 = vmatprep.subr.bf16.mxu1 %v615_v4  ;;  %v638_v21 = vld [vmem:[%s899_s1 + $0x90] ss:$8 sps:$4 sm:$0xff]   ;;  %v639_v22 = vld [vmem:[%s899_s1 + $0xa4] ss:$8 sps:$4 sm:$0xff]   ;;  %v641_v23 = vld [vmem:[%s899_s1 + $0xa0] ss:$8 sps:$4 sm:$0xff]  }
   0x9   :  { %327 = vmatprep.mubr.bf16.mxu0 %v659_v13  ;;  %v642_v24 = vld [vmem:[%s899_s1 + $0xb4] ss:$8 sps:$4 sm:$0xff]   ;;  %v644_v25 = vld [vmem:[%s899_s1 + $0xb0] ss:$8 sps:$4 sm:$0xff]   ;;  %v645_v26 = vld [vmem:[%s899_s1 + $0xc4] ss:$8 sps:$4 sm:$0xff]  }
   0xa   :  { %v647_v27 = vld [vmem:[%s899_s1 + $0xc0] ss:$8 sps:$4 sm:$0xff]   ;;  %v648_v28 = vld [vmem:[%s899_s1 + $0xd4] ss:$8 sps:$4 sm:$0xff]   ;;  %v650_v29 = vld [vmem:[%s899_s1 + $0xd0] ss:$8 sps:$4 sm:$0xff]  }
   0xb   :  { %300 = vmatpush1.bf16.msra.mxu0 %v617_v5  ;;  %594 = vmatpush1.bf16.msra.mxu1 %v617_v5  ;;  %v651_v30 = vld [vmem:[%s899_s1 + $0xe4] ss:$8 sps:$4 sm:$0xff]   ;;  %v653_v31 = vld [vmem:[%s899_s1 + $0xe0] ss:$8 sps:$4 sm:$0xff]   ;;  %v654_v32 = vld [vmem:[%s899_s1 + $0xf4] ss:$8 sps:$4 sm:$0xff]  }
   0xc   :  { %301 = vmatprep.subr.bf16.mxu0 %v618_v6  ;;  %579 = vmatprep.subr.bf16.mxu1 %v618_v6  ;;  %v656_v33 = vld [vmem:[%s899_s1 + $0xf0] ss:$8 sps:$4 sm:$0xff]   ;;  %v657_v34 = vld [vmem:[%s900_s0] ss:$8 sps:$4 sm:$0xff]   ;;  %v663_v36 = vld [vmem:[%s900_s0 + $0x14] ss:$8 sps:$4 sm:$0xff]  }
   0xd   :  { %v660_v35 = vld [vmem:[%s900_s0 + $0x30] ss:$8 sps:$4 sm:$0xff]   ;;  %v666_v37 = vld [vmem:[%s900_s0 + $0x44] ss:$8 sps:$4 sm:$0xff]   ;;  %v668_v39 = vld [vmem:[%s900_s0 + $0x40] ss:$8 sps:$4 sm:$0xff]  }
   0xe   :  { %v665_v38 = vld [vmem:[%s900_s0 + $0x10] ss:$8 sps:$4 sm:$0xff]   ;;  %v669_v40 = vld [vmem:[%s900_s0 + $0x24] ss:$8 sps:$4 sm:$0xff]   ;;  %v671_v41 = vld [vmem:[%s900_s0 + $0x20] ss:$8 sps:$4 sm:$0xff]  }
   0xf   :  { %302 = vmatpush1.bf16.msra.mxu0 %v620_v7  ;;  %595 = vmatpush1.bf16.msra.mxu1 %v620_v7 }
  0x10   :  { %303 = vmatprep.subr.bf16.mxu0 %v621_v8  ;;  %580 = vmatprep.subr.bf16.mxu1 %v621_v8 }
  0x13   :  { %304 = vmatpush1.bf16.msra.mxu0 %v623_v9  ;;  %596 = vmatpush1.bf16.msra.mxu1 %v623_v9 }
  0x14   :  { %305 = vmatprep.subr.bf16.mxu0 %v624_v10  ;;  %581 = vmatprep.subr.bf16.mxu1 %v624_v10 }
  0x17   :  { %306 = vmatpush1.bf16.msra.mxu0 %v626_v11  ;;  %597 = vmatpush1.bf16.msra.mxu1 %v626_v11 }
  0x18   :  { %307 = vmatprep.subr.bf16.mxu0 %v627_v12  ;;  %582 = vmatprep.subr.bf16.mxu1 %v627_v12 }
  0x1b   :  { %308 = vmatpush1.bf16.msra.mxu0 %v629_v14  ;;  %598 = vmatpush1.bf16.msra.mxu1 %v629_v14 }
  0x1c   :  { %309 = vmatprep.subr.bf16.mxu0 %v630_v16  ;;  %583 = vmatprep.subr.bf16.mxu1 %v630_v16 }
  0x1f   :  { %310 = vmatpush1.bf16.msra.mxu0 %v632_v17  ;;  %599 = vmatpush1.bf16.msra.mxu1 %v632_v17 }
  0x20   :  { %311 = vmatprep.subr.bf16.mxu0 %v633_v18  ;;  %584 = vmatprep.subr.bf16.mxu1 %v633_v18 }
  0x23   :  { %312 = vmatpush1.bf16.msra.mxu0 %v635_v19  ;;  %600 = vmatpush1.bf16.msra.mxu1 %v635_v19 }
  0x24   :  { %313 = vmatprep.subr.bf16.mxu0 %v636_v20  ;;  %585 = vmatprep.subr.bf16.mxu1 %v636_v20 }
  0x27   :  { %314 = vmatpush1.bf16.msra.mxu0 %v638_v21  ;;  %601 = vmatpush1.bf16.msra.mxu1 %v638_v21 }
  0x28   :  { %315 = vmatprep.subr.bf16.mxu0 %v639_v22  ;;  %586 = vmatprep.subr.bf16.mxu1 %v639_v22 }
  0x2b   :  { %316 = vmatpush1.bf16.msra.mxu0 %v641_v23  ;;  %602 = vmatpush1.bf16.msra.mxu1 %v641_v23 }
  0x2c   :  { %317 = vmatprep.subr.bf16.mxu0 %v642_v24  ;;  %587 = vmatprep.subr.bf16.mxu1 %v642_v24 }
  0x2f   :  { %318 = vmatpush1.bf16.msra.mxu0 %v644_v25  ;;  %603 = vmatpush1.bf16.msra.mxu1 %v644_v25 }
  0x30   :  { %319 = vmatprep.subr.bf16.mxu0 %v645_v26  ;;  %588 = vmatprep.subr.bf16.mxu1 %v645_v26 }
  0x33   :  { %320 = vmatpush1.bf16.msra.mxu0 %v647_v27  ;;  %604 = vmatpush1.bf16.msra.mxu1 %v647_v27 }
  0x34   :  { %321 = vmatprep.subr.bf16.mxu0 %v648_v28  ;;  %589 = vmatprep.subr.bf16.mxu1 %v648_v28 }
  0x37   :  { %322 = vmatpush1.bf16.msra.mxu0 %v650_v29  ;;  %605 = vmatpush1.bf16.msra.mxu1 %v650_v29 }
  0x38   :  { %323 = vmatprep.subr.bf16.mxu0 %v651_v30  ;;  %590 = vmatprep.subr.bf16.mxu1 %v651_v30 }
  0x3b   :  { %324 = vmatpush1.bf16.msra.mxu0 %v653_v31  ;;  %606 = vmatpush1.bf16.msra.mxu1 %v653_v31 }
  0x3c   :  { %325 = vmatprep.subr.bf16.mxu0 %v654_v32  ;;  %591 = vmatprep.subr.bf16.mxu1 %v654_v32 }
  0x3f   :  { %326 = vmatpush1.bf16.msra.mxu0 %v656_v33  ;;  %607 = vmatpush1.bf16.msra.mxu1 %v656_v33 }
  0x42   :  { %328 = vmatmul.mubr.bf16.vlgmr.msra.gmra.mrb[0].mxu0 %v657_v34  ;;  %358 = vmatmul.mubr.bf16.vlgmr.msra.gmra.mrb[0].mxu1 %v660_v35 }
  0x43   :  { %337 = vmatprep.mubr.bf16.mxu0 %v663_v36  ;;  %367 = vmatprep.mubr.bf16.mxu1 %v666_v37 }
  0x4a   :  { %338 = vmatmul.mubr.bf16.gmra.mrb[4].mxu0 %v665_v38  ;;  %368 = vmatmul.mubr.bf16.gmra.mrb[4].mxu1 %v668_v39 }
  0x4b   :  { %347 = vmatprep.mubr.bf16.mxu0 %v669_v40 }
  0x52   :  { %348 = vmatmul.mubr.bf16.gmra.mrb[8].mxu0 %v671_v41 }
 0x115   :  { %v329_v42 = vpop.f32.mrb[0].mxu0  ;;  %v359_v43 = vpop.f32.mrb[0].mxu1 }
 0x116   :  { %v378_v44 = vmul.f32 %v329_v42, %v329_v42  ;;  %v331_v45 = vpop.f32.mrb[1].mxu0  ;;  %v399_v46 = vmul.f32 %v359_v43, %v359_v43  ;;  %v361_v47 = vpop.f32.mrb[1].mxu1 }
 0x117   :  { %v383_v48 = vmul.f32 %v331_v45, %v331_v45  ;;  %v333_v49 = vpop.f32.mrb[2].mxu0  ;;  %v404_v50 = vmul.f32 %v361_v47, %v361_v47  ;;  %v363_v51 = vpop.f32.mrb[2].mxu1 }
 0x118   :  { %v379_v52 = vmul.f32 %v333_v49, %v333_v49  ;;  %v335_v53 = vpop.f32.mrb[3].mxu0  ;;  %v400_v54 = vmul.f32 %v363_v51, %v363_v51  ;;  %v365_v55 = vpop.f32.mrb[3].mxu1 }
 0x119   :  { %v388_v56 = vadd.f32 %v383_v48, %v378_v44  ;;  %v384_v57 = vmul.f32 %v335_v53, %v335_v53  ;;  %v409_v58 = vadd.f32 %v404_v50, %v399_v46  ;;  %v405_v59 = vmul.f32 %v365_v55, %v365_v55 }
 0x11b   :  { %v389_v60 = vadd.f32 %v384_v57, %v379_v52  ;;  %v843_v61 = vmax.f32 %v409_v58, 1e-08  ;;  %v410_v62 = vadd.f32 %v405_v59, %v400_v54  ;;  %v393_v16 = vmax.f32 %v388_v56, 1e-08 }
 0x11d   :  { %v394_v63 = vmax.f32 %v389_v60, 1e-08  ;;  %v339_v0 = vpop.f32.mrb[4].mxu0  ;;  %v369_v1 = vpop.f32.mrb[4].mxu1  ;;  %v849_v17 = vmax.f32 %v410_v62, 1e-08 }
 0x11e   :  { %v380_v2 = vmul.f32 %v339_v0, %v339_v0  ;;  %v341_v3 = vpop.f32.mrb[5].mxu0  ;;  %v401_v4 = vmul.f32 %v369_v1, %v369_v1  ;;  %v371_v5 = vpop.f32.mrb[5].mxu1 }
 0x11f   :  { %672 = vrcp.f32 %v394_v63  ;;  %v846_v6 = vadd.f32 %v843_v61, %v394_v63  ;;  %v454_v7 = vmul.f32 %v843_v61, %v394_v63  ;;  %v385_v8 = vmul.f32 %v341_v3, %v341_v3  ;;  %v343_v9 = vpop.f32.mrb[6].mxu0  ;;  %v373_v10 = vpop.f32.mrb[6].mxu1 }
 0x120   :  { %v381_v11 = vmul.f32 %v343_v9, %v343_v9  ;;  %v345_v12 = vpop.f32.mrb[7].mxu0  ;;  %v406_v13 = vmul.f32 %v371_v5, %v371_v5  ;;  %v402_v14 = vmul.f32 %v373_v10, %v373_v10  ;;  %v375_v15 = vpop.f32.mrb[7].mxu1 }
 0x121   :  { %674 = vrsqrt.f32 %v454_v7  ;;  %v390_v18 = vadd.f32 %v385_v8, %v380_v2  ;;  %v386_v19 = vmul.f32 %v345_v12, %v345_v12  ;;  %v407_v21 = vmul.f32 %v375_v15, %v375_v15 }
 0x122   :  { %v411_v20 = vadd.f32 %v406_v13, %v401_v4  ;;  %676 = vrcp.f32 %v393_v16  ;;  %vm467_vm0 = vcmp.eq.f32.partialorder %v454_v7, inf  ;;  %vm469_vm1 = vcmp.eq.f32.partialorder %v454_v7, 0.0 }
 0x123   :  { %v395_v22 = vmax.f32 %v390_v18, 1e-08  ;;  %v391_v23 = vadd.f32 %v386_v19, %v381_v11  ;;  %v412_v24 = vadd.f32 %v407_v21, %v402_v14  ;;  %v470_v47 = vand.u32 2147483648, %v454_v7 }
 0x124   :  { %v851_v25 = vmax.f32 %v411_v20, 1e-08 }
 0x125   :  { %v349_v26 = vpop.f32.mrb[8].mxu0  ;;  %678 = vrcp.f32 %v395_v22  ;;  %v854_v27 = vadd.f32 %v849_v17, %v395_v22  ;;  %v455_v28 = vmul.f32 %v849_v17, %v395_v22  ;;  %v396_v29 = vmax.f32 %v391_v23, 1e-08 }
 0x126   :  { %v351_v30 = vpop.f32.mrb[9].mxu0  ;;  %v382_v31 = vmul.f32 %v349_v26, %v349_v26  ;;  %v417_v40 = vmax.f32 %v412_v24, 1e-08 }
 0x127   :  { %v387_v32 = vmul.f32 %v351_v30, %v351_v30  ;;  %v353_v33 = vpop.f32.mrb[10].mxu0  ;;  %680 = vrsqrt.f32 %v455_v28  ;;  %v858_v36 = vadd.f32 %v851_v25, %v396_v29  ;;  %v456_v37 = vmul.f32 %v851_v25, %v396_v29 }
 0x128   :  { %v355_v34 = vpop.f32.mrb[11].mxu0  ;;  %682 = vrcp.f32 %v396_v29  ;;  %v398_v41 = vmul.f32 %v353_v33, %v353_v33  ;;  %vm474_vm2 = vcmp.eq.f32.partialorder %v455_v28, inf  ;;  %v477_v2 = vand.u32 2147483648, %v455_v28 }
 0x129   :  { %v673_v35 = vpop.eup %672  ;;  %v392_v38 = vadd.f32 %v387_v32, %v382_v31  ;;  %v403_v42 = vmul.f32 %v355_v34, %v355_v34  ;;  %684 = vrsqrt.f32 %v456_v37  ;;  %vm476_vm3 = vcmp.eq.f32.partialorder %v455_v28, 0.0 }
 0x12a   :  { %v424_v39 = vmul.f32 %v673_v35, %v843_v61  ;;  %vm481_vm4 = vcmp.eq.f32.partialorder %v456_v37, inf  ;;  %v484_v11 = vand.u32 2147483648, %v456_v37  ;;  %vm483_vm5 = vcmp.eq.f32.partialorder %v456_v37, 0.0 }
 0x12b   :  { %v675_v43 = vpop.eup %674  ;;  %v397_v45 = vmax.f32 %v392_v38, 1e-08  ;;  %v408_v46 = vadd.f32 %v403_v42, %v398_v41 }
 0x12c   :  { %v466_v44 = vmul.f32 %v675_v43, %v454_v7  ;;  %686 = vlog2.f32 %v424_v39  ;;  %v677_v51 = vpop.eup %676 }
 0x12d   :  { %688 = vrcp.f32 %v397_v45  ;;  %v862_v49 = vadd.f32 %v417_v40, %v397_v45  ;;  %v457_v50 = vmul.f32 %v417_v40, %v397_v45  ;;  %v413_v53 = vmax.f32 %v408_v46, 1e-08 }
 0x12e   :  { %v468_v48 = vsel %vm467_vm0, %v454_v7, %v466_v44 }
 0x12f   :  { %v471_v52 = vsel %vm469_vm1, %v470_v47, %v468_v48  ;;  %v679_v54 = vpop.eup %678  ;;  %690 = vrsqrt.f32 %v457_v50  ;;  %v423_v57 = vmul.f32 %v677_v51, %v413_v53  ;;  %v867_v58 = vadd.f32 %v413_v53, %v393_v16 }
 0x130   :  { %v864_v55 = vmul.f32 2.0, %v471_v52  ;;  %v425_v56 = vmul.f32 %v679_v54, %v849_v17  ;;  %v871_v62 = vmul.f32 %v413_v53, %v393_v16  ;;  %v518_v63 = vadd.f32 %v843_v61, %v413_v53 }
 0x131   :  { %v681_v59 = vpop.eup %680  ;;  %vm488_vm6 = vcmp.eq.f32.partialorder %v457_v50, inf  ;;  %v491_v24 = vand.u32 2147483648, %v457_v50  ;;  %vm490_vm7 = vcmp.eq.f32.partialorder %v457_v50, 0.0 }
 0x132   :  { %v499_v60 = vsub.f32 %v846_v6, %v864_v55  ;;  %v683_v0 = vpop.eup %682  ;;  %692 = vlog2.f32 %v425_v56  ;;  %v473_v1 = vmul.f32 %v681_v59, %v455_v28  ;;  %v519_v7 = vadd.f32 %v518_v63, %v849_v17 }
 0x133   :  { %v426_v3 = vmul.f32 %v683_v0, %v851_v25  ;;  %694 = vlog2.f32 %v423_v57  ;;  %v685_v4 = vpop.eup %684  ;;  %vm460_vm8 = vcmp.eq.f32.partialorder %v871_v62, inf  ;;  %vm462_vm9 = vcmp.eq.f32.partialorder %v871_v62, 0.0 }
 0x134   :  { %v475_v5 = vsel %vm474_vm2, %v455_v28, %v473_v1  ;;  %696 = vrsqrt.f32 %v871_v62  ;;  %v480_v9 = vmul.f32 %v685_v4, %v456_v37  ;;  %v520_v12 = vadd.f32 %v519_v7, %v851_v25 }
 0x135   :  { %v478_v8 = vsel %vm476_vm3, %v477_v2, %v475_v5  ;;  %698 = vlog2.f32 %v426_v3 }
 0x136   :  { %v687_v10 = vpop.eup %686  ;;  %v495_v61 = vmul.f32 2.0, %v478_v8  ;;  %v482_v14 = vsel %vm481_vm4, %v456_v37, %v480_v9  ;;  %v521_v17 = vadd.f32 %v520_v12, %v417_v40 }
 0x137   :  { %v689_v13 = vpop.eup %688  ;;  %v485_v16 = vsel %vm483_vm5, %v484_v11, %v482_v14  ;;  %v431_v20 = vmul.f32 0.6931472, %v687_v10 }
 0x138   :  { %v500_v15 = vsub.f32 %v854_v27, %v495_v61  ;;  %v427_v18 = vmul.f32 %v689_v13, %v417_v40  ;;  %v496_v21 = vmul.f32 2.0, %v485_v16  ;;  %523 = vst [vmem:[%s901_s2 + $0x10] sm:$0xff] %v521_v17  ;;  %v463_v40 = vand.u32 2147483648, %v871_v62 }
 0x139   :  { %v691_v19 = vpop.eup %690  ;;  %v439_v29 = vand.u32 2147483647, %v431_v20 }
 0x13a   :  { %700 = vlog2.f32 %v427_v18  ;;  %v487_v22 = vmul.f32 %v691_v19, %v457_v50  ;;  %v501_v23 = vsub.f32 %v858_v36, %v496_v21 }
 0x13b   :  { %v444_v41 = vmul.f32 0.5, %v439_v29 }
 0x13c   :  { %v693_v26 = vpop.eup %692  ;;  %v489_v28 = vsel %vm488_vm6, %v457_v50, %v487_v22 }
 0x13d   :  { %v695_v25 = vpop.eup %694  ;;  %v433_v30 = vmul.f32 0.6931472, %v693_v26  ;;  %v492_v31 = vsel %vm490_vm7, %v491_v24, %v489_v28 }
 0x13e   :  { %v697_v27 = vpop.eup %696  ;;  %v497_v32 = vmul.f32 2.0, %v492_v31  ;;  %v429_v33 = vmul.f32 0.6931472, %v695_v25 }
 0x13f   :  { %v699_v34 = vpop.eup %698  ;;  %v440_v35 = vand.u32 2147483647, %v433_v30  ;;  %v459_v36 = vmul.f32 %v697_v27, %v871_v62 }
 0x140   :  { %v435_v37 = vmul.f32 0.6931472, %v699_v34  ;;  %v502_v38 = vsub.f32 %v862_v49, %v497_v32  ;;  %v438_v39 = vand.u32 2147483647, %v429_v33 }
 0x141   :  { %v461_v42 = vsel %vm460_vm8, %v871_v62, %v459_v36  ;;  %v445_v43 = vmul.f32 0.5, %v440_v35 }
 0x142   :  { %v441_v44 = vand.u32 2147483647, %v435_v37  ;;  %v443_v45 = vmul.f32 0.5, %v438_v39  ;;  %v464_v46 = vsel %vm462_vm9, %v463_v40, %v461_v42 }
 0x143   :  { %v493_v47 = vmul.f32 2.0, %v464_v46 }
 0x144   :  { %v701_v48 = vpop.eup %700  ;;  %v446_v50 = vmul.f32 0.5, %v441_v44  ;;  %v504_v51 = vadd.f32 %v444_v41, %v443_v45 }
 0x145   :  { %v437_v52 = vmul.f32 0.6931472, %v701_v48  ;;  %v498_v53 = vsub.f32 %v867_v58, %v493_v47 }
 0x146   :  { %v505_v49 = vadd.f32 %v504_v51, %v445_v43 }
 0x147   :  { %v442_v54 = vand.u32 2147483647, %v437_v52  ;;  %v511_v56 = vadd.f32 %v499_v60, %v498_v53 }
 0x148   :  { %v506_v57 = vadd.f32 %v505_v49, %v446_v50 }
 0x149   :  { %v447_v59 = vmul.f32 0.5, %v442_v54  ;;  %v512_v62 = vadd.f32 %v511_v56, %v500_v15 }
 0x14b   :  { %v507_v63 = vadd.f32 %v506_v57, %v447_v59  ;;  %v513_v0 = vadd.f32 %v512_v62, %v501_v23 }
 0x14d   :  { %v514_v1 = vadd.f32 %v513_v0, %v502_v38  ;;  %509 = vst [vmem:[%s901_s2] sm:$0xff] %v507_v63 }
 0x14f   :  { %516 = vst [vmem:[%s901_s2 + $0x8] sm:$0xff] %v514_v1 }

// kernel: _forward_impl.5
= control target key start
LH: loop header
LB: loop body
LE: loop exit
PB: predicated region body
PF: predicated region fallthrough
CT: control target
= control target key end

     0   :  { %v808_v0 = vmov 0.0   ;;  %vm809_vm0 = vmmov 0   ;;  %s810_s14 = smov 64   ;;  %vm562_vm5 = vcmask 523264   ;;  %s1230_s1 = inlined_call_operand.vmem [shape: bf16[128,128], index: 1, kind: input, shape index: {}]   ;;  %s1231_s0 = inlined_call_operand.vmem [shape: bf16[144,128], index: 0, kind: input, shape index: {}]   ;;  %s1232_s2 = inlined_call_operand.vmem [shape: f32[24,128], index: 2, kind: output, shape index: {}]  }
   0x1   :  { %666 = vmatprep.subr.bf16.mxu0 %v808_v0  ;;  %718 = vmatprep.subr.bf16.mxu1 %v808_v0  ;;  %v737_v1 = vld [vmem:[%s1230_s1] sm:$0xff]   ;;  %v738_v2 = vld [vmem:[%s1230_s1 + $0x8] sm:$0xff]   ;;  %v739_v3 = vld [vmem:[%s1230_s1 + $0x10] sm:$0xff]   ;;  %38 = vst [vmem:[%s1232_s2] sm:$0xff] %v808_v0 }
   0x2   :  { %682 = vmatprep.mubr.msk.bf16.mxu0 %vm809_vm0, %v808_v0  ;;  %702 = vmatprep.mubr.msk.bf16.mxu1 %vm809_vm0, %v808_v0  ;;  %v740_v4 = vld [vmem:[%s1230_s1 + $0x18] sm:$0xff]   ;;  %v741_v5 = vld [vmem:[%s1230_s1 + $0x20] sm:$0xff]   ;;  %v742_v6 = vld [vmem:[%s1230_s1 + $0x28] sm:$0xff]   ;;  %39 = vst [vmem:[%s1232_s2 + $0x8] sm:$0xff] %v808_v0 }
   0x3   :  { %667 = vmatpush3.bf16.msra.mxu0 %v737_v1  ;;  %726 = vmatpush3.bf16.msra.mxu1 %v737_v1  ;;  %v743_v7 = vld [vmem:[%s1230_s1 + $0x30] sm:$0xff]   ;;  %v744_v8 = vld [vmem:[%s1230_s1 + $0x38] sm:$0xff]   ;;  %v745_v9 = vld [vmem:[%s1231_s0] sm:$0xff]   ;;  %40 = vst [vmem:[%s1232_s2 + $0x10] sm:$0xff] %v808_v0 }
   0x4   :  { %668 = vmatprep.subr.bf16.mxu0 %v808_v0  ;;  %719 = vmatprep.subr.bf16.mxu1 %v808_v0  ;;  %v746_v10 = vld [vmem:[%s1231_s0 + $0x28] sm:$0xff]   ;;  %v749_v12 = vld [vmem:[%s1231_s0 + $0x30] sm:$0xff]   ;;  %v751_v14 = vld [vmem:[%s1231_s0 + $0x38] sm:$0xff]  }
   0x5   :  { %v747_v11 = vld [vmem:[%s1231_s0 + $0x8] sm:$0xff]   ;;  %v748_v13 = vld [vmem:[%s1231_s0 + $0x10] sm:$0xff]   ;;  %v750_v15 = vld [vmem:[%s1231_s0 + $0x18] sm:$0xff]  }
   0x6   :  { %v753_v16 = vld [vmem:[%s1231_s0 + $0x40] sm:$0xff]  }
   0x7   :  { %669 = vmatpush3.bf16.msra.mxu0 %v738_v2  ;;  %727 = vmatpush3.bf16.msra.mxu1 %v738_v2  ;;  %v752_v17 = vld [vmem:[%s1231_s0 + $0x20] sm:$0xff]  }
   0x8   :  { %670 = vmatprep.subr.bf16.mxu0 %v808_v0  ;;  %720 = vmatprep.subr.bf16.mxu1 %v808_v0 }
   0xb   :  { %671 = vmatpush3.bf16.msra.mxu0 %v739_v3  ;;  %728 = vmatpush3.bf16.msra.mxu1 %v739_v3 }
   0xc   :  { %672 = vmatprep.subr.bf16.mxu0 %v808_v0  ;;  %721 = vmatprep.subr.bf16.mxu1 %v808_v0 }
   0xf   :  { %673 = vmatpush3.bf16.msra.mxu0 %v740_v4  ;;  %729 = vmatpush3.bf16.msra.mxu1 %v740_v4 }
  0x10   :  { %674 = vmatprep.subr.bf16.mxu0 %v808_v0  ;;  %722 = vmatprep.subr.bf16.mxu1 %v808_v0 }
  0x13   :  { %675 = vmatpush3.bf16.msra.mxu0 %v741_v5  ;;  %730 = vmatpush3.bf16.msra.mxu1 %v741_v5 }
  0x14   :  { %676 = vmatprep.subr.bf16.mxu0 %v808_v0  ;;  %723 = vmatprep.subr.bf16.mxu1 %v808_v0 }
  0x17   :  { %677 = vmatpush3.bf16.msra.mxu0 %v742_v6  ;;  %731 = vmatpush3.bf16.msra.mxu1 %v742_v6 }
  0x18   :  { %678 = vmatprep.subr.bf16.mxu0 %v808_v0  ;;  %724 = vmatprep.subr.bf16.mxu1 %v808_v0 }
  0x1b   :  { %679 = vmatpush3.bf16.msra.mxu0 %v743_v7  ;;  %732 = vmatpush3.bf16.msra.mxu1 %v743_v7 }
  0x1c   :  { %680 = vmatprep.subr.bf16.mxu0 %v808_v0  ;;  %725 = vmatprep.subr.bf16.mxu1 %v808_v0 }
  0x1f   :  { %681 = vmatpush3.bf16.msra.mxu0 %v744_v8  ;;  %733 = vmatpush3.bf16.msra.mxu1 %v744_v8 }
  0x22   :  { %683 = vmatmul.mubr.bf16.vlgmr.msra.gmra.mrb[0].mxu0 %v745_v9  ;;  %703 = vmatmul.mubr.bf16.vlgmr.msra.gmra.mrb[0].mxu1 %v746_v10 }
  0x23   :  { %686 = vmatprep.mubr.msk.bf16.mxu0 %vm809_vm0, %v808_v0  ;;  %706 = vmatprep.mubr.msk.bf16.mxu1 %vm809_vm0, %v808_v0 }
  0x2a   :  { %687 = vmatmul.mubr.bf16.gmra.mrb[4].mxu0 %v747_v11  ;;  %707 = vmatmul.mubr.bf16.gmra.mrb[4].mxu1 %v749_v12 }
  0x2b   :  { %690 = vmatprep.mubr.msk.bf16.mxu0 %vm809_vm0, %v808_v0  ;;  %710 = vmatprep.mubr.msk.bf16.mxu1 %vm809_vm0, %v808_v0 }
  0x32   :  { %691 = vmatmul.mubr.bf16.gmra.mrb[8].mxu0 %v748_v13  ;;  %711 = vmatmul.mubr.bf16.gmra.mrb[8].mxu1 %v751_v14 }
  0x33   :  { %694 = vmatprep.mubr.msk.bf16.mxu0 %vm809_vm0, %v808_v0  ;;  %714 = vmatprep.mubr.msk.bf16.mxu1 %vm809_vm0, %v808_v0 }
  0x3a   :  { %695 = vmatmul.mubr.bf16.gmra.mrb[12].mxu0 %v750_v15  ;;  %715 = vmatmul.mubr.bf16.gmra.mrb[12].mxu1 %v753_v16 }
  0x3b   :  { %698 = vmatprep.mubr.msk.bf16.mxu0 %vm809_vm0, %v808_v0 }
  0x42   :  { %699 = vmatmul.mubr.bf16.gmra.mrb[16].mxu0 %v752_v17 }
  0xf5   :  { %v211_v18 = vpop.f32.mrb[0].mxu0  ;;  %v251_v19 = vpop.f32.mrb[0].mxu1 }
  0xf6   :  { %v911_v20 = vmul.f32 %v211_v18, %v211_v18  ;;  %v913_v21 = vmul.f32 %v251_v19, %v251_v19  ;;  %v684_v22 = vpop.f32.mrb[1].mxu0  ;;  %v704_v23 = vpop.f32.mrb[1].mxu1 }
  0xf7   :  { %v214_v24 = vpop.f32.mrb[2].mxu0  ;;  %v254_v25 = vpop.f32.mrb[2].mxu1 }
  0xf8   :  { %365 = vrot.lane.b32.xlu1 %v913_v21, %s810_s14  ;;  %300 = vrot.lane.b32.xlu0 %v911_v20, %s810_s14  ;;  %v685_v26 = vpop.f32.mrb[3].mxu0  ;;  %v919_v27 = vmul.f32 %v254_v25, %v254_v25  ;;  %v705_v28 = vpop.f32.mrb[3].mxu1  ;;  %v921_v29 = vmul.f32 %v214_v24, %v214_v24 }
  0xfc   :  { %367 = vrot.lane.b32.xlu1 %v919_v27, %s810_s14  ;;  %302 = vrot.lane.b32.xlu0 %v921_v29, %s810_s14 }
  0xfd   :  { %v219_v30 = vpop.f32.mrb[4].mxu0  ;;  %v259_v31 = vpop.f32.mrb[4].mxu1 }
  0xfe   :  { %v927_v32 = vmul.f32 %v219_v30, %v219_v30  ;;  %v688_v33 = vpop.f32.mrb[5].mxu0  ;;  %v708_v34 = vpop.f32.mrb[5].mxu1  ;;  %v943_v50 = vmul.f32 %v259_v31, %v259_v31 }
  0xff   :  { %v222_v35 = vpop.f32.mrb[6].mxu0  ;;  %v262_v36 = vpop.f32.mrb[6].mxu1 }
 0x100   :  { %304 = vrot.lane.b32.xlu1 %v927_v32, %s810_s14  ;;  %v689_v37 = vpop.f32.mrb[7].mxu0  ;;  %v709_v38 = vpop.f32.mrb[7].mxu1  ;;  %v931_v39 = vmul.f32 %v222_v35, %v222_v35  ;;  %v949_v55 = vmul.f32 %v262_v36, %v262_v36 }
 0x104   :  { %306 = vrot.lane.b32.xlu1 %v931_v39, %s810_s14 }
 0x105   :  { %v227_v40 = vpop.f32.mrb[8].mxu0  ;;  %v267_v41 = vpop.f32.mrb[8].mxu1 }
 0x106   :  { %v935_v42 = vmul.f32 %v227_v40, %v227_v40  ;;  %v692_v43 = vpop.f32.mrb[9].mxu0  ;;  %v712_v44 = vpop.f32.mrb[9].mxu1  ;;  %v975_v7 = vmul.f32 %v267_v41, %v267_v41 }
 0x107   :  { %v230_v45 = vpop.f32.mrb[10].mxu0  ;;  %v270_v46 = vpop.f32.mrb[10].mxu1 }
 0x108   :  { %v937_v47 = vmul.f32 %v230_v45, %v230_v45  ;;  %308 = vrot.lane.b32.xlu0 %v935_v42, %s810_s14  ;;  %v693_v48 = vpop.f32.mrb[11].mxu0  ;;  %v713_v49 = vpop.f32.mrb[11].mxu1  ;;  %v957_v62 = vmul.f32 %v270_v46, %v270_v46 }
 0x10a   :  { %310 = vrot.lane.b32.xlu1 %v937_v47, %s810_s14 }
 0x10d   :  { %v235_v51 = vpop.f32.mrb[12].mxu0  ;;  %v275_v52 = vpop.f32.mrb[12].mxu1 }
 0x10e   :  { %v945_v53 = vmul.f32 %v235_v51, %v235_v51  ;;  %369 = vrot.lane.b32.xlu1 %v943_v50, %s810_s14  ;;  %v696_v54 = vpop.f32.mrb[13].mxu0  ;;  %v716_v56 = vpop.f32.mrb[13].mxu1  ;;  %v977_v8 = vmul.f32 %v275_v52, %v275_v52 }
 0x10f   :  { %v238_v57 = vpop.f32.mrb[14].mxu0  ;;  %v278_v58 = vpop.f32.mrb[14].mxu1 }
 0x110   :  { %312 = vrot.lane.b32.xlu0 %v945_v53, %s810_s14  ;;  %v697_v59 = vpop.f32.mrb[15].mxu0  ;;  %v717_v60 = vpop.f32.mrb[15].mxu1  ;;  %v953_v61 = vmul.f32 %v238_v57, %v238_v57  ;;  %v963_v2 = vmul.f32 %v278_v58, %v278_v58 }
 0x112   :  { %371 = vrot.lane.b32.xlu1 %v949_v55, %s810_s14 }
 0x114   :  { %314 = vrot.lane.b32.xlu0 %v953_v61, %s810_s14 }
 0x115   :  { %v243_v63 = vpop.f32.mrb[16].mxu0 }
 0x116   :  { %375 = vrot.lane.b32.xlu1 %v957_v62, %s810_s14  ;;  %v700_v1 = vpop.f32.mrb[17].mxu0  ;;  %v971_v6 = vmul.f32 %v243_v63, %v243_v63 }
 0x117   :  { %v246_v3 = vpop.f32.mrb[18].mxu0 }
 0x118   :  { %v965_v4 = vmul.f32 %v246_v3, %v246_v3  ;;  %v701_v5 = vpop.f32.mrb[19].mxu0 }
 0x11a   :  { %379 = vrot.lane.b32.xlu1 %v963_v2, %s810_s14  ;;  %363 = vrot.lane.b32.xlu0 %v965_v4, %s810_s14 }
 0x11e   :  { %316 = vrot.lane.b32.xlu0 %v971_v6, %s810_s14 }
 0x122   :  { %373 = vrot.lane.b32.xlu0 %v975_v7, %s810_s14 }
 0x126   :  { %377 = vrot.lane.b32.xlu0 %v977_v8, %s810_s14 }
 0x16a   :  { %v366_v9 = vpop.permute.xlu1 %365  ;;  %v301_v10 = vpop.permute.xlu0 %300 }
 0x16b   :  { %v391_v11 = vadd.f32 %v366_v9, %v913_v21  ;;  %v327_v43 = vadd.f32 %v301_v10, %v911_v20 }
 0x16d   :  { %v997_v15 = vmax.f32 %v391_v11, 1e-08  ;;  %v1032_v20 = vmax.f32 %v327_v43, 1e-08 }
 0x16e   :  { %v368_v12 = vpop.permute.xlu1 %367  ;;  %v303_v13 = vpop.permute.xlu0 %302 }
 0x16f   :  { %v328_v14 = vadd.f32 %v303_v13, %v921_v29  ;;  %v392_v17 = vadd.f32 %v368_v12, %v919_v27 }
 0x171   :  { %v999_v16 = vmax.f32 %v328_v14, 1e-08  ;;  %v1006_v21 = vmax.f32 %v392_v17, 1e-08 }
 0x172   :  { %v305_v18 = vpop.permute.xlu1 %304 }
 0x173   :  { %v472_v19 = vmul.f32 %v997_v15, %v999_v16  ;;  %754 = vrcp.f32 %v999_v16  ;;  %v329_v0 = vadd.f32 %v305_v18, %v927_v32  ;;  %v463_v10 = vadd.f32 %v997_v15, %v999_v16 }
 0x174   :  { %v604_v16 = vsel %vm562_vm5, %v997_v15, 0.0 }
 0x175   :  { %756 = vrsqrt.f32 %v472_v19  ;;  %v1008_v22 = vmax.f32 %v329_v0, 1e-08  ;;  %vm489_vm1 = vcmp.eq.f32.partialorder %v472_v19, inf  ;;  %v492_v44 = vand.u32 2147483648, %v472_v19 }
 0x176   :  { %v307_v23 = vpop.permute.xlu1 %306  ;;  %vm491_vm3 = vcmp.eq.f32.partialorder %v472_v19, 0.0 }
 0x177   :  { %v330_v24 = vadd.f32 %v307_v23, %v931_v39  ;;  %758 = vrcp.f32 %v1008_v22  ;;  %v473_v25 = vmul.f32 %v1006_v21, %v1008_v22  ;;  %v464_v18 = vadd.f32 %v1006_v21, %v1008_v22 }
 0x179   :  { %v1014_v26 = vmax.f32 %v330_v24, 1e-08  ;;  %760 = vrsqrt.f32 %v473_v25  ;;  %vm496_vm2 = vcmp.eq.f32.partialorder %v473_v25, inf  ;;  %v499_v56 = vand.u32 2147483648, %v473_v25 }
 0x17a   :  { %v309_v27 = vpop.permute.xlu0 %308  ;;  %vm498_vm4 = vcmp.eq.f32.partialorder %v473_v25, 0.0 }
 0x17b   :  { %762 = vrcp.f32 %v1014_v26  ;;  %v331_v28 = vadd.f32 %v309_v27, %v935_v42  ;;  %v606_v27 = vsel %vm562_vm5, %v1006_v21, 0.0 }
 0x17c   :  { %v311_v29 = vpop.permute.xlu1 %310 }
 0x17d   :  { %v1018_v30 = vmax.f32 %v331_v28, 1e-08  ;;  %v755_v31 = vpop.eup %754  ;;  %v332_v59 = vadd.f32 %v311_v29, %v937_v47 }
 0x17e   :  { %v418_v34 = vmul.f32 %v755_v31, %v997_v15 }
 0x17f   :  { %v757_v32 = vpop.eup %756  ;;  %764 = vrcp.f32 %v1018_v30  ;;  %v1043_v13 = vmax.f32 %v332_v59, 1e-08 }
 0x180   :  { %v370_v33 = vpop.permute.xlu1 %369  ;;  %v488_v35 = vmul.f32 %v757_v32, %v472_v19  ;;  %766 = vlog2.f32 %v418_v34 }
 0x181   :  { %v393_v36 = vadd.f32 %v370_v33, %v943_v50  ;;  %v759_v37 = vpop.eup %758 }
 0x182   :  { %v313_v38 = vpop.permute.xlu0 %312  ;;  %v419_v39 = vmul.f32 %v759_v37, %v1006_v21  ;;  %v490_v48 = vsel %vm489_vm1, %v472_v19, %v488_v35 }
 0x183   :  { %v402_v40 = vmax.f32 %v393_v36, 1e-08  ;;  %v333_v41 = vadd.f32 %v313_v38, %v945_v53  ;;  %v761_v42 = vpop.eup %760  ;;  %v493_v54 = vsel %vm491_vm3, %v492_v44, %v490_v48 }
 0x184   :  { %v372_v45 = vpop.permute.xlu1 %371  ;;  %v495_v49 = vmul.f32 %v761_v42, %v473_v25  ;;  %768 = vlog2.f32 %v419_v39  ;;  %v544_v5 = vmul.f32 2.0, %v493_v54 }
 0x185   :  { %v763_v46 = vpop.eup %762  ;;  %v1027_v51 = vmul.f32 %v402_v40, %v1014_v26  ;;  %v1029_v52 = vmax.f32 %v333_v41, 1e-08  ;;  %v394_v60 = vadd.f32 %v372_v45, %v949_v55  ;;  %v1067_v29 = vsel %vm562_vm5, %v402_v40, 0.0 }
 0x186   :  { %v420_v50 = vmul.f32 %v763_v46, %v402_v40  ;;  %v497_v53 = vsel %vm496_vm2, %v473_v25, %v495_v49  ;;  %v315_v57 = vpop.permute.xlu0 %314 }
 0x187   :  { %770 = vrsqrt.f32 %v1027_v51  ;;  %v500_v1 = vsel %vm498_vm4, %v499_v56, %v497_v53  ;;  %v403_v9 = vmax.f32 %v394_v60, 1e-08  ;;  %v334_v19 = vadd.f32 %v315_v57, %v953_v61 }
 0x188   :  { %772 = vlog2.f32 %v420_v50  ;;  %v376_v58 = vpop.permute.xlu1 %375  ;;  %v545_v47 = vmul.f32 2.0, %v500_v1  ;;  %v1062_v61 = vadd.f32 %v402_v40, %v1014_v26  ;;  %vm503_vm6 = vcmp.eq.f32.partialorder %v1027_v51, inf }
 0x189   :  { %774 = vrcp.f32 %v1029_v52  ;;  %v765_v63 = vpop.eup %764  ;;  %v396_v3 = vadd.f32 %v376_v58, %v957_v62  ;;  %v1046_v55 = vmul.f32 %v403_v9, %v1018_v30  ;;  %v553_v62 = vsub.f32 %v463_v10, %v544_v5 }
 0x18a   :  { %776 = vrcp.f32 %v1032_v20  ;;  %v421_v14 = vmul.f32 %v765_v63, %v403_v9  ;;  %v767_v17 = vpop.eup %766  ;;  %v554_v28 = vsub.f32 %v464_v18, %v545_v47  ;;  %vm505_vm7 = vcmp.eq.f32.partialorder %v1027_v51, 0.0 }
 0x18b   :  { %v1041_v11 = vmax.f32 %v396_v3, 1e-08  ;;  %v429_v33 = vmul.f32 0.6931472, %v767_v17  ;;  %v1071_v21 = vsel %vm562_vm5, %v553_v62, 0.0  ;;  %v1084_v39 = vadd.f32 %v403_v9, %v1018_v30 }
 0x18c   :  { %v364_v12 = vpop.permute.xlu0 %363  ;;  %778 = vlog2.f32 %v421_v14  ;;  %v1074_v34 = vmax.f32 %v334_v19, 1e-08  ;;  %v380_v26 = vpop.permute.xlu1 %379  ;;  %v1080_v38 = vsel %vm562_vm5, %v554_v28, 0.0  ;;  %v610_v44 = vsel %vm562_vm5, %v403_v9, 0.0 }
 0x18d   :  { %780 = vrsqrt.f32 %v1046_v55  ;;  %v1056_v23 = vmul.f32 %v1041_v11, %v1029_v52  ;;  %v390_v31 = vadd.f32 %v364_v12, %v965_v4  ;;  %v506_v4 = vand.u32 2147483648, %v1027_v51 }
 0x18e   :  { %v769_v0 = vpop.eup %768  ;;  %782 = vrcp.f32 %v1043_v13  ;;  %v398_v45 = vadd.f32 %v380_v26, %v963_v2  ;;  %v445_v46 = vand.u32 2147483647, %v429_v33  ;;  %v1102_v2 = vadd.f32 %v1041_v11, %v1029_v52 }
 0x18f   :  { %v431_v35 = vmul.f32 0.6931472, %v769_v0  ;;  %784 = vrsqrt.f32 %v1056_v23  ;;  %v399_v40 = vmax.f32 %v390_v31, 1e-08  ;;  %vm510_vm8 = vcmp.eq.f32.partialorder %v1046_v55, inf }
 0x190   :  { %v317_v24 = vpop.permute.xlu0 %316  ;;  %786 = vrcp.f32 %v1074_v34  ;;  %v1106_v60 = vmax.f32 %v398_v45, 1e-08  ;;  %vm512_vm9 = vcmp.eq.f32.partialorder %v1046_v55, 0.0  ;;  %v513_v5 = vand.u32 2147483648, %v1046_v55 }
 0x191   :  { %v771_v25 = vpop.eup %770  ;;  %v335_v37 = vadd.f32 %v317_v24, %v971_v6  ;;  %v1093_v49 = vmul.f32 %v399_v40, %v1032_v20  ;;  %v446_v30 = vand.u32 2147483647, %v431_v35  ;;  %v603_v50 = vsel %vm562_vm5, %v399_v40, 0.0 }
 0x192   :  { %v773_v22 = vpop.eup %772  ;;  %v502_v15 = vmul.f32 %v771_v25, %v1027_v51  ;;  %v605_v1 = vadd.f32 %v604_v16, %v603_v50  ;;  %vm524_vm10 = vcmp.eq.f32.partialorder %v1056_v23, inf  ;;  %v527_v18 = vand.u32 2147483648, %v1056_v23 }
 0x193   :  { %v775_v32 = vpop.eup %774  ;;  %v433_v42 = vmul.f32 0.6931472, %v773_v22  ;;  %v1096_v53 = vmax.f32 %v335_v37, 1e-08  ;;  %v455_v52 = vmul.f32 0.5, %v446_v30  ;;  %v614_v19 = vsel %vm562_vm5, %v1041_v11, 0.0 }
 0x194   :  { %v423_v36 = vmul.f32 %v775_v32, %v1041_v11  ;;  %v777_v41 = vpop.eup %776  ;;  %v504_v43 = vsel %vm503_vm6, %v1027_v51, %v502_v15  ;;  %v374_v6 = vpop.permute.xlu0 %373  ;;  %v454_v51 = vmul.f32 0.5, %v445_v46  ;;  %v607_v47 = vadd.f32 %v606_v27, %v605_v1 }
 0x195   :  { %v417_v48 = vmul.f32 %v777_v41, %v399_v40  ;;  %v507_v56 = vsel %vm505_vm7, %v506_v4, %v504_v43  ;;  %v395_v57 = vadd.f32 %v374_v6, %v975_v7  ;;  %v447_v59 = vand.u32 2147483647, %v433_v42 }
 0x196   :  { %788 = vlog2.f32 %v423_v36  ;;  %v779_v54 = vpop.eup %778  ;;  %v546_v3 = vmul.f32 2.0, %v507_v56  ;;  %v1114_v7 = vmul.f32 %v1106_v60, %v1096_v53  ;;  %v1125_v0 = vsel %vm562_vm5, %v1106_v60, 0.0 }
 0x197   :  { %790 = vlog2.f32 %v417_v48  ;;  %v781_v58 = vpop.eup %780  ;;  %v435_v10 = vmul.f32 0.6931472, %v779_v54  ;;  %v1117_v14 = vmax.f32 %v395_v57, 1e-08  ;;  %v456_v62 = vmul.f32 0.5, %v447_v59 }
 0x198   :  { %792 = vrsqrt.f32 %v1093_v49  ;;  %v783_v63 = vpop.eup %782  ;;  %v378_v9 = vpop.permute.xlu0 %377  ;;  %v509_v12 = vmul.f32 %v781_v58, %v1046_v55  ;;  %v564_v16 = vsel %vm562_vm5, %v454_v51, 0.0  ;;  %v555_v25 = vsub.f32 %v1062_v61, %v546_v3 }
 0x199   :  { %794 = vrcp.f32 %v1096_v53  ;;  %v785_v17 = vpop.eup %784  ;;  %v397_v24 = vadd.f32 %v378_v9, %v977_v8  ;;  %vm526_vm11 = vcmp.eq.f32.partialorder %v1056_v23, 0.0  ;;  %v566_v27 = vsel %vm562_vm5, %v455_v52, 0.0 }
 0x19a   :  { %796 = vrsqrt.f32 %v1114_v7  ;;  %v462_v28 = vadd.f32 %v399_v40, %v1032_v20  ;;  %v609_v11 = vadd.f32 %v1067_v29, %v607_v47  ;;  %v787_v22 = vpop.eup %786  ;;  %v448_v15 = vand.u32 2147483647, %v435_v10 }
 0x19b   :  { %v511_v31 = vsel %vm510_vm8, %v1046_v55, %v509_v12  ;;  %v523_v32 = vmul.f32 %v785_v17, %v1056_v23  ;;  %v422_v8 = vmul.f32 %v783_v63, %v1117_v14  ;;  %v568_v61 = vsel %vm562_vm5, %v456_v62, 0.0 }
 0x19c   :  { %vm482_vm12 = vcmp.eq.f32.partialorder %v1093_v49, inf  ;;  %v611_v26 = vadd.f32 %v610_v44, %v609_v11  ;;  %v1144_v20 = vmul.f32 %v1117_v14, %v1043_v13  ;;  %vm484_vm13 = vcmp.eq.f32.partialorder %v1093_v49, 0.0 }
 0x19d   :  { %798 = vlog2.f32 %v422_v8  ;;  %v612_v35 = vsel %vm562_vm5, %v1117_v14, 0.0  ;;  %v1149_v36 = vmax.f32 %v397_v24, 1e-08  ;;  %v588_v4 = vsel %vm562_vm5, %v555_v25, 0.0 }
 0x19e   :  { %v514_v40 = vsel %vm512_vm9, %v513_v5, %v511_v31  ;;  %800 = vrsqrt.f32 %v1144_v20  ;;  %v457_v43 = vmul.f32 0.5, %v448_v15  ;;  %v525_v44 = vsel %vm524_vm10, %v1056_v23, %v523_v32 }
 0x19f   :  { %v485_v6 = vand.u32 2147483648, %v1093_v49  ;;  %v613_v30 = vadd.f32 %v612_v35, %v611_v26  ;;  %v424_v55 = vmul.f32 %v787_v22, %v1149_v36  ;;  %v547_v50 = vmul.f32 2.0, %v514_v40 }
 0x1a0   :  { %v789_v33 = vpop.eup %788  ;;  %v1167_v57 = vmul.f32 %v1149_v36, %v1074_v34  ;;  %v528_v1 = vsel %vm526_vm11, %v527_v18, %v525_v44  ;;  %vm538_vm14 = vcmp.eq.f32.partialorder %v1114_v7, inf  ;;  %v570_v3 = vsel %vm562_vm5, %v457_v43, 0.0 }
 0x1a1   :  { %v791_v29 = vpop.eup %790  ;;  %v439_v54 = vmul.f32 0.6931472, %v789_v33  ;;  %v615_v63 = vadd.f32 %v614_v19, %v613_v30  ;;  %vm540_vm15 = vcmp.eq.f32.partialorder %v1114_v7, 0.0  ;;  %v616_v12 = vsel %vm562_vm5, %v1149_v36, 0.0 }
 0x1a2   :  { %v793_v37 = vpop.eup %792  ;;  %v427_v41 = vmul.f32 0.6931472, %v791_v29  ;;  %v549_v23 = vmul.f32 2.0, %v528_v1  ;;  %v541_v17 = vand.u32 2147483648, %v1114_v7  ;;  %v556_v19 = vsub.f32 %v1084_v39, %v547_v50 }
 0x1a3   :  { %v795_v42 = vpop.eup %794  ;;  %v481_v45 = vmul.f32 %v793_v37, %v1093_v49  ;;  %v617_v62 = vadd.f32 %v616_v12, %v615_v63  ;;  %v467_v11 = vadd.f32 %v1117_v14, %v1043_v13  ;;  %vm517_vm0 = vcmp.eq.f32.partialorder %v1144_v20, inf }
 0x1a4   :  { %v444_v46 = vand.u32 2147483647, %v427_v41  ;;  %v425_v48 = vmul.f32 %v795_v42, %v1106_v60  ;;  %v797_v51 = vpop.eup %796  ;;  %v520_v39 = vand.u32 2147483648, %v1144_v20  ;;  %vm519_vm1 = vcmp.eq.f32.partialorder %v1144_v20, 0.0 }
 0x1a5   :  { %v483_v56 = vsel %vm482_vm12, %v1093_v49, %v481_v45  ;;  %v450_v49 = vand.u32 2147483647, %v439_v54  ;;  %v537_v47 = vmul.f32 %v797_v51, %v1114_v7  ;;  %v619_v15 = vadd.f32 %v1125_v0, %v617_v62 }
 0x1a6   :  { %v453_v58 = vmul.f32 0.5, %v444_v46  ;;  %v486_v59 = vsel %vm484_vm13, %v485_v6, %v483_v56  ;;  %802 = vlog2.f32 %v425_v48  ;;  %vm531_vm2 = vcmp.eq.f32.partialorder %v1167_v57, inf }
 0x1a7   :  { %v543_v52 = vmul.f32 2.0, %v486_v59  ;;  %804 = vlog2.f32 %v424_v55  ;;  %v799_v18 = vpop.eup %798  ;;  %v459_v31 = vmul.f32 0.5, %v450_v49  ;;  %v539_v13 = vsel %vm538_vm14, %v1114_v7, %v537_v47  ;;  %621 = vst.msk [vmem:[%s1232_s2 + $0x10] sm:$0xff] %vm562_vm5, %v619_v15 }
 0x1a8   :  { %v563_v5 = vsel %vm562_vm5, %v453_v58, 0.0  ;;  %806 = vrsqrt.f32 %v1167_v57  ;;  %v437_v22 = vmul.f32 0.6931472, %v799_v18  ;;  %v542_v41 = vsel %vm540_vm15, %v541_v17, %v539_v13 }
 0x1a9   :  { %v552_v9 = vsub.f32 %v462_v28, %v543_v52  ;;  %v565_v10 = vadd.f32 %v564_v16, %v563_v5  ;;  %v801_v28 = vpop.eup %800  ;;  %v574_v40 = vsel %vm562_vm5, %v459_v31, 0.0  ;;  %v551_v30 = vmul.f32 2.0, %v542_v41 }
 0x1aa   :  { %v516_v8 = vmul.f32 %v801_v28, %v1144_v20  ;;  %v449_v14 = vand.u32 2147483647, %v437_v22  ;;  %vm533_vm3 = vcmp.eq.f32.partialorder %v1167_v57, 0.0  ;;  %v534_v7 = vand.u32 2147483648, %v1167_v57 }
 0x1ab   :  { %v567_v24 = vadd.f32 %v566_v27, %v565_v10  ;;  %v583_v25 = vsel %vm562_vm5, %v552_v9, 0.0  ;;  %v470_v52 = vadd.f32 %v1106_v60, %v1096_v53 }
 0x1ac   :  { %v585_v16 = vadd.f32 %v1071_v21, %v583_v25  ;;  %v558_v21 = vsub.f32 %v1102_v2, %v549_v23  ;;  %v518_v26 = vsel %vm517_vm0, %v1144_v20, %v516_v8  ;;  %v458_v35 = vmul.f32 0.5, %v449_v14 }
 0x1ad   :  { %v569_v32 = vadd.f32 %v568_v61, %v567_v24  ;;  %v590_v61 = vsel %vm562_vm5, %v556_v19, 0.0  ;;  %v521_v37 = vsel %vm519_vm1, %v520_v39, %v518_v26  ;;  %v560_v12 = vsub.f32 %v470_v52, %v551_v30 }
 0x1ae   :  { %v587_v27 = vadd.f32 %v1080_v38, %v585_v16  ;;  %v548_v42 = vmul.f32 2.0, %v521_v37  ;;  %v572_v44 = vsel %vm562_vm5, %v458_v35, 0.0  ;;  %v594_v1 = vsel %vm562_vm5, %v558_v21, 0.0 }
 0x1af   :  { %v571_v33 = vadd.f32 %v570_v3, %v569_v32  ;;  %v469_v3 = vadd.f32 %v1149_v36, %v1074_v34  ;;  %v598_v18 = vsel %vm562_vm5, %v560_v12, 0.0 }
 0x1b0   :  { %v803_v0 = vpop.eup %802  ;;  %v589_v29 = vadd.f32 %v588_v4, %v587_v27  ;;  %v557_v6 = vsub.f32 %v467_v11, %v548_v42 }
 0x1b1   :  { %v805_v38 = vpop.eup %804  ;;  %v443_v2 = vmul.f32 0.6931472, %v803_v0  ;;  %v573_v46 = vadd.f32 %v572_v44, %v571_v33 }
 0x1b2   :  { %v807_v20 = vpop.eup %806  ;;  %v591_v43 = vadd.f32 %v590_v61, %v589_v29  ;;  %v441_v4 = vmul.f32 0.6931472, %v805_v38  ;;  %v592_v54 = vsel %vm562_vm5, %v557_v6, 0.0 }
 0x1b3   :  { %v452_v45 = vand.u32 2147483647, %v443_v2  ;;  %v530_v48 = vmul.f32 %v807_v20, %v1167_v57  ;;  %v575_v56 = vadd.f32 %v574_v40, %v573_v46 }
 0x1b4   :  { %v451_v55 = vand.u32 2147483647, %v441_v4  ;;  %v593_v59 = vadd.f32 %v592_v54, %v591_v43 }
 0x1b5   :  { %v461_v50 = vmul.f32 0.5, %v452_v45  ;;  %v532_v58 = vsel %vm531_vm2, %v1167_v57, %v530_v48 }
 0x1b6   :  { %v460_v63 = vmul.f32 0.5, %v451_v55  ;;  %v535_v51 = vsel %vm533_vm3, %v534_v7, %v532_v58  ;;  %v595_v9 = vadd.f32 %v594_v1, %v593_v59 }
 0x1b7   :  { %v550_v5 = vmul.f32 2.0, %v535_v51  ;;  %v578_v49 = vsel %vm562_vm5, %v461_v50, 0.0 }
 0x1b8   :  { %v576_v10 = vsel %vm562_vm5, %v460_v63, 0.0 }
 0x1b9   :  { %v559_v23 = vsub.f32 %v469_v3, %v550_v5  ;;  %v577_v57 = vadd.f32 %v576_v10, %v575_v56 }
 0x1bb   :  { %v579_v47 = vadd.f32 %v578_v49, %v577_v57  ;;  %v596_v17 = vsel %vm562_vm5, %v559_v23, 0.0 }
 0x1bc   :  { %v597_v62 = vadd.f32 %v596_v17, %v595_v9 }
 0x1bd   :  { %581 = vst.msk [vmem:[%s1232_s2] sm:$0xff] %vm562_vm5, %v579_v47 }
 0x1be   :  { %v599_v19 = vadd.f32 %v598_v18, %v597_v62 }
 0x1c0   :  { %601 = vst.msk [vmem:[%s1232_s2 + $0x8] sm:$0xff] %vm562_vm5, %v599_v19 }

</bundles_post_ra>
